<compile_context>
chip_gen: v7x
topology: tpu7x:2x2x1
jax: 0.10.0
libtpu: 0.0.40
codegen_flags: <defaults>
</compile_context>

<pallas_src>
import jax
import jax.numpy as jnp
from jax import lax
from jax.experimental import pallas as pl
from jax.experimental.pallas import tpu as pltpu


def lstm_last_linear_kernel(x_ref, wih_ref, whh_ref, b_ref, wlin_ref, blin_ref,
                            out_ref):
    """Full LSTM recurrence + final linear layer in one invocation.

    x_ref   : (T*Bp, D)  time-major input, batch padded to Bp (mult. of 8),
                         row layout t*Bp + b
    wih_ref : (D, 4H)    input->gates weight, PyTorch gate order (i, f, g, o)
    whh_ref : (H, 4H)    hidden->gates weight, PyTorch gate order (i, f, g, o)
    b_ref   : (1, 4H)    b_ih + b_hh combined
    wlin_ref: (H, O)     linear weight (pre-transposed)
    blin_ref: (1, O)     linear bias
    out_ref : (Bp, O)    output (padded rows are garbage, sliced off outside)
    """
    TB, _ = x_ref.shape
    H = whh_ref.shape[0]
    Bp = out_ref.shape[0]
    T = TB // Bp

    # ---------------- Preamble (off the recurrence critical path) -----------
    # Hoisted input projection + combined bias for ALL timesteps at once.
    x_proj = (
        jnp.dot(x_ref[...], wih_ref[...], preferred_element_type=jnp.float32)
        + b_ref[...]
    )                                                        # (T*Bp, 4H)

    # Split hidden->gate weight into per-gate (H, H) blocks ONCE.  Each
    # per-step dot then produces a gate that is already lane-aligned at lanes
    # 0..H-1, so no lane rotates sit on the serial recurrence chain.
    whh = whh_ref[...]
    w_i = whh[:, 0 * H:1 * H]
    w_f = whh[:, 1 * H:2 * H]
    w_g = whh[:, 2 * H:3 * H]
    w_o = whh[:, 3 * H:4 * H]

    # h / c live in vregs for the whole recurrence (Bp is sublane-aligned).
    h = jnp.zeros((Bp, H), jnp.float32)
    c = jnp.zeros((Bp, H), jnp.float32)

    # Fully unrolled recurrence (T is small & static, live set is tiny).
    for t in range(T):
        xp = x_proj[t * Bp:(t + 1) * Bp, :]                  # sublane-aligned view
        # Four independent small dots -> pipeline on the MXU; each gate lands
        # lane-aligned with h / c.  x_proj gate slices depend only on the
        # preamble, so their extraction is off the critical chain.
        i_g = jax.nn.sigmoid(
            xp[:, 0 * H:1 * H]
            + jnp.dot(h, w_i, preferred_element_type=jnp.float32))
        f_g = jax.nn.sigmoid(
            xp[:, 1 * H:2 * H]
            + jnp.dot(h, w_f, preferred_element_type=jnp.float32))
        g_g = jnp.tanh(
            xp[:, 2 * H:3 * H]
            + jnp.dot(h, w_g, preferred_element_type=jnp.float32))
        o_g = jax.nn.sigmoid(
            xp[:, 3 * H:4 * H]
            + jnp.dot(h, w_o, preferred_element_type=jnp.float32))
        c = f_g * c + i_g * g_g
        h = o_g * jnp.tanh(c)

    # Final linear on the last hidden state (still in registers).
    out_ref[...] = (
        jnp.dot(h, wlin_ref[...], preferred_element_type=jnp.float32)
        + blin_ref[...]
    )


def prepare_params(params):
    """One-time weight preparation (hoisted out of the per-call forward path)."""
    H = params["w_hh"].shape[1]
    O = params["w_lin"].shape[0]
    return {
        "wih_t": params["w_ih"].T,                                  # (D, 4H)
        "whh_t": params["w_hh"].T,                                  # (H, 4H)
        "b": (params["b_ih"] + params["b_hh"]).reshape(1, 4 * H),   # (1, 4H)
        "wlin_t": params["w_lin"].T,                                # (H, O)
        "blin": params["b_lin"].reshape(1, O),                      # (1, O)
    }


@jax.jit
def test_model_forward(x, prepped):
    """x: (B, T, input_size) float32 (batch-first, like PyTorch).

    `prepped` is the output of prepare_params() -- computed once, reused.
    """
    B, T, D = x.shape
    H = prepped["whh_t"].shape[0]
    O = prepped["wlin_t"].shape[1]

    # Pad batch to the 8-row f32 sublane tile so every per-timestep slice in
    # the kernel is a whole, aligned vreg view.  (Under jit the transpose +
    # pad + reshape fuse into one tiny fusion feeding the custom call.)
    Bp = ((B + 7) // 8) * 8
    x_tm = jnp.swapaxes(x, 0, 1)                              # (T, B, D)
    x_tm = jnp.pad(x_tm, ((0, 0), (0, Bp - B), (0, 0)))       # (T, Bp, D)
    x_flat = x_tm.reshape(T * Bp, D)                          # row t*Bp + b

    # Advisory cost hint so XLA treats the custom call as cheap.
    flops = int(
        2 * T * Bp * D * 4 * H        # hoisted input projection
        + 2 * T * Bp * H * 4 * H      # recurrence gate dots
        + 10 * T * Bp * H             # cell / hidden elementwise updates
        + 2 * Bp * H * O              # final linear
    )
    transcendentals = int(T * Bp * 5 * H)
    bytes_accessed = int(4 * (T * Bp * D + D * 4 * H + H * 4 * H + 4 * H
                              + H * O + O + Bp * O))

    vmem_spec = pl.BlockSpec(memory_space=pltpu.MemorySpace.VMEM)
    out_pad = pl.pallas_call(
        lstm_last_linear_kernel,
        out_shape=jax.ShapeDtypeStruct((Bp, O), jnp.float32),
        in_specs=[vmem_spec] * 6,
        out_specs=vmem_spec,
        cost_estimate=pl.CostEstimate(
            flops=flops,
            transcendentals=transcendentals,
            bytes_accessed=bytes_accessed,
        ),
        # NOTE(v7x): single grid point => one TensorCore.  Resident data is
        # <32 KB so VMEM limits are irrelevant on every generation; if B ever
        # grows to many sublane tiles, add a batch grid axis with
        # dimension_semantics=("parallel",) to use the second TC.
    )(x_flat, prepped["wih_t"], prepped["whh_t"], prepped["b"],
      prepped["wlin_t"], prepped["blin"])

    return out_pad[:B]


def reference_forward(x, params):
    """Pure-JAX reference matching torch nn.LSTM(batch_first=True) + Linear."""
    wih, whh, bih, bhh, wlin, blin = (
        params["w_ih"], params["w_hh"], params["b_ih"], params["b_hh"],
        params["w_lin"], params["b_lin"],
    )
    B = x.shape[0]
    H = whh.shape[1]

    def step(carry, x_t):
        h, c = carry
        gates = x_t @ wih.T + bih + h @ whh.T + bhh
        i, f, g, o = jnp.split(gates, 4, axis=-1)
        i = jax.nn.sigmoid(i)
        f = jax.nn.sigmoid(f)
        g = jnp.tanh(g)
        o = jax.nn.sigmoid(o)
        c = f * c + i * g
        h = o * jnp.tanh(c)
        return (h, c), h

    h0 = jnp.zeros((B, H), jnp.float32)
    c0 = jnp.zeros((B, H), jnp.float32)
    (h_last, _), _ = lax.scan(step, (h0, c0), jnp.swapaxes(x, 0, 1))
    return h_last @ wlin.T + blin


def init_params(key, input_size, hidden_size):
    """Deterministic init mirroring the shapes nn.LSTM / nn.Linear produce.

    Only lstm_1 (hidden_size // 2) and linear matter for the output; lstm_0 is
    dead code in the PyTorch forward and is not materialized.
    """
    H = hidden_size // 2
    O = 2
    k = jax.random.split(key, 6)
    bound = 1.0 / jnp.sqrt(jnp.float32(H))
    u = lambda kk, shape: jax.random.uniform(kk, shape, jnp.float32, -bound, bound)
    return {
        "w_ih": u(k[0], (4 * H, input_size)),   # PyTorch gate order: i, f, g, o
        "w_hh": u(k[1], (4 * H, H)),
        "b_ih": u(k[2], (4 * H,)),
        "b_hh": u(k[3], (4 * H,)),
        "w_lin": u(k[4], (O, H)),
        "b_lin": u(k[5], (O,)),
    }


if __name__ == "__main__":
    B, T, INPUT_SIZE, HIDDEN_SIZE = 2, 8, 16, 32

    key = jax.random.PRNGKey(0)
    kx, kp = jax.random.split(key)
    x = jax.random.normal(kx, (B, T, INPUT_SIZE), jnp.float32)
    params = init_params(kp, INPUT_SIZE, HIDDEN_SIZE)

    # One-time weight prep (hoisted out of the hot forward path).
    prepped = prepare_params(params)
    prepped = jax.block_until_ready(prepped)

    out = test_model_forward(x, prepped)
    out = jax.block_until_ready(out)

    ref = jax.block_until_ready(reference_forward(x, params))
    assert out.shape == (B, 2), out.shape
    assert jnp.allclose(out, ref, atol=1e-5, rtol=1e-5), (out, ref)

    print("KERNEL_OK")
</pallas_src>

<mosaic_0001>
module attributes {stable_mosaic.version = 11 : i64} {
  func.func @lstm_last_linear_kernel(%arg0: memref<64x16xf32, #tpu.memory_space<vmem>>, %arg1: memref<16x64xf32, #tpu.memory_space<vmem>>, %arg2: memref<16x64xf32, #tpu.memory_space<vmem>>, %arg3: memref<1x64xf32, #tpu.memory_space<vmem>>, %arg4: memref<16x2xf32, #tpu.memory_space<vmem>>, %arg5: memref<1x2xf32, #tpu.memory_space<vmem>>, %arg6: memref<8x2xf32, #tpu.memory_space<vmem>>) attributes {dimension_semantics = [], scalar_prefetch = 0 : i64, scratch_operands = 0 : i64, tpu.core_type = #tpu.core_type<tc>} {
    %c0 = arith.constant 0 : index
    %c0_0 = arith.constant 0 : index
    %0 = vector.load %arg0[%c0, %c0_0] : memref<64x16xf32, #tpu.memory_space<vmem>>, vector<64x16xf32>
    %c0_1 = arith.constant 0 : index
    %c0_2 = arith.constant 0 : index
    %1 = vector.load %arg1[%c0_1, %c0_2] : memref<16x64xf32, #tpu.memory_space<vmem>>, vector<16x64xf32>
    %cst = arith.constant dense<0.000000e+00> : vector<64x64xf32>
    %2 = tpu.matmul %0, %1, %cst {dimension_numbers = #tpu.dot_dimension_numbers<[1], [0], [0], [1], [0, 0, 1, 1], [], []>} : vector<64x16xf32>, vector<16x64xf32>, vector<64x64xf32> -> vector<64x64xf32>
    %c0_3 = arith.constant 0 : index
    %c0_4 = arith.constant 0 : index
    %3 = vector.load %arg3[%c0_3, %c0_4] : memref<1x64xf32, #tpu.memory_space<vmem>>, vector<1x64xf32>
    %4 = vector.broadcast %3 : vector<1x64xf32> to vector<64x64xf32>
    %5 = arith.addf %2, %4 : vector<64x64xf32>
    %c0_5 = arith.constant 0 : index
    %c0_6 = arith.constant 0 : index
    %6 = vector.load %arg2[%c0_5, %c0_6] : memref<16x64xf32, #tpu.memory_space<vmem>>, vector<16x64xf32>
    %7 = vector.extract_strided_slice %6 {offsets = [0, 0], sizes = [16, 16], strides = [1, 1]} : vector<16x64xf32> to vector<16x16xf32>
    %8 = vector.extract_strided_slice %6 {offsets = [0, 16], sizes = [16, 16], strides = [1, 1]} : vector<16x64xf32> to vector<16x16xf32>
    %9 = vector.extract_strided_slice %6 {offsets = [0, 32], sizes = [16, 16], strides = [1, 1]} : vector<16x64xf32> to vector<16x16xf32>
    %10 = vector.extract_strided_slice %6 {offsets = [0, 48], sizes = [16, 16], strides = [1, 1]} : vector<16x64xf32> to vector<16x16xf32>
    %cst_7 = arith.constant 0.000000e+00 : f32
    %11 = vector.broadcast %cst_7 : f32 to vector<8x16xf32>
    %cst_8 = arith.constant 0.000000e+00 : f32
    %12 = vector.broadcast %cst_8 : f32 to vector<8x16xf32>
    %13 = vector.extract_strided_slice %5 {offsets = [0, 0], sizes = [8, 64], strides = [1, 1]} : vector<64x64xf32> to vector<8x64xf32>
    %14 = vector.extract_strided_slice %13 {offsets = [0, 0], sizes = [8, 16], strides = [1, 1]} : vector<8x64xf32> to vector<8x16xf32>
    %cst_9 = arith.constant dense<0.000000e+00> : vector<8x16xf32>
    %15 = tpu.matmul %11, %7, %cst_9 {dimension_numbers = #tpu.dot_dimension_numbers<[1], [0], [0], [1], [0, 0, 1, 1], [], []>} : vector<8x16xf32>, vector<16x16xf32>, vector<8x16xf32> -> vector<8x16xf32>
    %16 = arith.addf %14, %15 : vector<8x16xf32>
    %17 = arith.negf %16 : vector<8x16xf32>
    %18 = math.exp %17 : vector<8x16xf32>
    %cst_10 = arith.constant 1.000000e+00 : f32
    %19 = vector.broadcast %cst_10 : f32 to vector<8x16xf32>
    %20 = arith.addf %19, %18 : vector<8x16xf32>
    %21 = arith.divf %19, %20 : vector<8x16xf32>
    %22 = vector.extract_strided_slice %13 {offsets = [0, 16], sizes = [8, 16], strides = [1, 1]} : vector<8x64xf32> to vector<8x16xf32>
    %cst_11 = arith.constant dense<0.000000e+00> : vector<8x16xf32>
    %23 = tpu.matmul %11, %8, %cst_11 {dimension_numbers = #tpu.dot_dimension_numbers<[1], [0], [0], [1], [0, 0, 1, 1], [], []>} : vector<8x16xf32>, vector<16x16xf32>, vector<8x16xf32> -> vector<8x16xf32>
    %24 = arith.addf %22, %23 : vector<8x16xf32>
    %25 = arith.negf %24 : vector<8x16xf32>
    %26 = math.exp %25 : vector<8x16xf32>
    %cst_12 = arith.constant 1.000000e+00 : f32
    %27 = vector.broadcast %cst_12 : f32 to vector<8x16xf32>
    %28 = arith.addf %27, %26 : vector<8x16xf32>
    %29 = arith.divf %27, %28 : vector<8x16xf32>
    %30 = vector.extract_strided_slice %13 {offsets = [0, 32], sizes = [8, 16], strides = [1, 1]} : vector<8x64xf32> to vector<8x16xf32>
    %cst_13 = arith.constant dense<0.000000e+00> : vector<8x16xf32>
    %31 = tpu.matmul %11, %9, %cst_13 {dimension_numbers = #tpu.dot_dimension_numbers<[1], [0], [0], [1], [0, 0, 1, 1], [], []>} : vector<8x16xf32>, vector<16x16xf32>, vector<8x16xf32> -> vector<8x16xf32>
    %32 = arith.addf %30, %31 : vector<8x16xf32>
    %33 = math.tanh %32 : vector<8x16xf32>
    %34 = vector.extract_strided_slice %13 {offsets = [0, 48], sizes = [8, 16], strides = [1, 1]} : vector<8x64xf32> to vector<8x16xf32>
    %cst_14 = arith.constant dense<0.000000e+00> : vector<8x16xf32>
    %35 = tpu.matmul %11, %10, %cst_14 {dimension_numbers = #tpu.dot_dimension_numbers<[1], [0], [0], [1], [0, 0, 1, 1], [], []>} : vector<8x16xf32>, vector<16x16xf32>, vector<8x16xf32> -> vector<8x16xf32>
    %36 = arith.addf %34, %35 : vector<8x16xf32>
    %37 = arith.negf %36 : vector<8x16xf32>
    %38 = math.exp %37 : vector<8x16xf32>
    %cst_15 = arith.constant 1.000000e+00 : f32
    %39 = vector.broadcast %cst_15 : f32 to vector<8x16xf32>
    %40 = arith.addf %39, %38 : vector<8x16xf32>
    %41 = arith.divf %39, %40 : vector<8x16xf32>
    %42 = arith.mulf %29, %12 : vector<8x16xf32>
    %43 = arith.mulf %21, %33 : vector<8x16xf32>
    %44 = arith.addf %42, %43 : vector<8x16xf32>
    %45 = math.tanh %44 : vector<8x16xf32>
    %46 = arith.mulf %41, %45 : vector<8x16xf32>
    %47 = vector.extract_strided_slice %5 {offsets = [8, 0], sizes = [8, 64], strides = [1, 1]} : vector<64x64xf32> to vector<8x64xf32>
    %48 = vector.extract_strided_slice %47 {offsets = [0, 0], sizes = [8, 16], strides = [1, 1]} : vector<8x64xf32> to vector<8x16xf32>
    %cst_16 = arith.constant dense<0.000000e+00> : vector<8x16xf32>
    %49 = tpu.matmul %46, %7, %cst_16 {dimension_numbers = #tpu.dot_dimension_numbers<[1], [0], [0], [1], [0, 0, 1, 1], [], []>} : vector<8x16xf32>, vector<16x16xf32>, vector<8x16xf32> -> vector<8x16xf32>
    %50 = arith.addf %48, %49 : vector<8x16xf32>
    %51 = arith.negf %50 : vector<8x16xf32>
    %52 = math.exp %51 : vector<8x16xf32>
    %cst_17 = arith.constant 1.000000e+00 : f32
    %53 = vector.broadcast %cst_17 : f32 to vector<8x16xf32>
    %54 = arith.addf %53, %52 : vector<8x16xf32>
    %55 = arith.divf %53, %54 : vector<8x16xf32>
    %56 = vector.extract_strided_slice %47 {offsets = [0, 16], sizes = [8, 16], strides = [1, 1]} : vector<8x64xf32> to vector<8x16xf32>
    %cst_18 = arith.constant dense<0.000000e+00> : vector<8x16xf32>
    %57 = tpu.matmul %46, %8, %cst_18 {dimension_numbers = #tpu.dot_dimension_numbers<[1], [0], [0], [1], [0, 0, 1, 1], [], []>} : vector<8x16xf32>, vector<16x16xf32>, vector<8x16xf32> -> vector<8x16xf32>
    %58 = arith.addf %56, %57 : vector<8x16xf32>
    %59 = arith.negf %58 : vector<8x16xf32>
    %60 = math.exp %59 : vector<8x16xf32>
    %cst_19 = arith.constant 1.000000e+00 : f32
    %61 = vector.broadcast %cst_19 : f32 to vector<8x16xf32>
    %62 = arith.addf %61, %60 : vector<8x16xf32>
    %63 = arith.divf %61, %62 : vector<8x16xf32>
    %64 = vector.extract_strided_slice %47 {offsets = [0, 32], sizes = [8, 16], strides = [1, 1]} : vector<8x64xf32> to vector<8x16xf32>
    %cst_20 = arith.constant dense<0.000000e+00> : vector<8x16xf32>
    %65 = tpu.matmul %46, %9, %cst_20 {dimension_numbers = #tpu.dot_dimension_numbers<[1], [0], [0], [1], [0, 0, 1, 1], [], []>} : vector<8x16xf32>, vector<16x16xf32>, vector<8x16xf32> -> vector<8x16xf32>
    %66 = arith.addf %64, %65 : vector<8x16xf32>
    %67 = math.tanh %66 : vector<8x16xf32>
    %68 = vector.extract_strided_slice %47 {offsets = [0, 48], sizes = [8, 16], strides = [1, 1]} : vector<8x64xf32> to vector<8x16xf32>
    %cst_21 = arith.constant dense<0.000000e+00> : vector<8x16xf32>
    %69 = tpu.matmul %46, %10, %cst_21 {dimension_numbers = #tpu.dot_dimension_numbers<[1], [0], [0], [1], [0, 0, 1, 1], [], []>} : vector<8x16xf32>, vector<16x16xf32>, vector<8x16xf32> -> vector<8x16xf32>
    %70 = arith.addf %68, %69 : vector<8x16xf32>
    %71 = arith.negf %70 : vector<8x16xf32>
    %72 = math.exp %71 : vector<8x16xf32>
    %cst_22 = arith.constant 1.000000e+00 : f32
    %73 = vector.broadcast %cst_22 : f32 to vector<8x16xf32>
    %74 = arith.addf %73, %72 : vector<8x16xf32>
    %75 = arith.divf %73, %74 : vector<8x16xf32>
    %76 = arith.mulf %63, %44 : vector<8x16xf32>
    %77 = arith.mulf %55, %67 : vector<8x16xf32>
    %78 = arith.addf %76, %77 : vector<8x16xf32>
    %79 = math.tanh %78 : vector<8x16xf32>
    %80 = arith.mulf %75, %79 : vector<8x16xf32>
    %81 = vector.extract_strided_slice %5 {offsets = [16, 0], sizes = [8, 64], strides = [1, 1]} : vector<64x64xf32> to vector<8x64xf32>
    %82 = vector.extract_strided_slice %81 {offsets = [0, 0], sizes = [8, 16], strides = [1, 1]} : vector<8x64xf32> to vector<8x16xf32>
    %cst_23 = arith.constant dense<0.000000e+00> : vector<8x16xf32>
    %83 = tpu.matmul %80, %7, %cst_23 {dimension_numbers = #tpu.dot_dimension_numbers<[1], [0], [0], [1], [0, 0, 1, 1], [], []>} : vector<8x16xf32>, vector<16x16xf32>, vector<8x16xf32> -> vector<8x16xf32>
    %84 = arith.addf %82, %83 : vector<8x16xf32>
    %85 = arith.negf %84 : vector<8x16xf32>
    %86 = math.exp %85 : vector<8x16xf32>
    %cst_24 = arith.constant 1.000000e+00 : f32
    %87 = vector.broadcast %cst_24 : f32 to vector<8x16xf32>
    %88 = arith.addf %87, %86 : vector<8x16xf32>
    %89 = arith.divf %87, %88 : vector<8x16xf32>
    %90 = vector.extract_strided_slice %81 {offsets = [0, 16], sizes = [8, 16], strides = [1, 1]} : vector<8x64xf32> to vector<8x16xf32>
    %cst_25 = arith.constant dense<0.000000e+00> : vector<8x16xf32>
    %91 = tpu.matmul %80, %8, %cst_25 {dimension_numbers = #tpu.dot_dimension_numbers<[1], [0], [0], [1], [0, 0, 1, 1], [], []>} : vector<8x16xf32>, vector<16x16xf32>, vector<8x16xf32> -> vector<8x16xf32>
    %92 = arith.addf %90, %91 : vector<8x16xf32>
    %93 = arith.negf %92 : vector<8x16xf32>
    %94 = math.exp %93 : vector<8x16xf32>
    %cst_26 = arith.constant 1.000000e+00 : f32
    %95 = vector.broadcast %cst_26 : f32 to vector<8x16xf32>
    %96 = arith.addf %95, %94 : vector<8x16xf32>
    %97 = arith.divf %95, %96 : vector<8x16xf32>
    %98 = vector.extract_strided_slice %81 {offsets = [0, 32], sizes = [8, 16], strides = [1, 1]} : vector<8x64xf32> to vector<8x16xf32>
    %cst_27 = arith.constant dense<0.000000e+00> : vector<8x16xf32>
    %99 = tpu.matmul %80, %9, %cst_27 {dimension_numbers = #tpu.dot_dimension_numbers<[1], [0], [0], [1], [0, 0, 1, 1], [], []>} : vector<8x16xf32>, vector<16x16xf32>, vector<8x16xf32> -> vector<8x16xf32>
    %100 = arith.addf %98, %99 : vector<8x16xf32>
    %101 = math.tanh %100 : vector<8x16xf32>
    %102 = vector.extract_strided_slice %81 {offsets = [0, 48], sizes = [8, 16], strides = [1, 1]} : vector<8x64xf32> to vector<8x16xf32>
    %cst_28 = arith.constant dense<0.000000e+00> : vector<8x16xf32>
    %103 = tpu.matmul %80, %10, %cst_28 {dimension_numbers = #tpu.dot_dimension_numbers<[1], [0], [0], [1], [0, 0, 1, 1], [], []>} : vector<8x16xf32>, vector<16x16xf32>, vector<8x16xf32> -> vector<8x16xf32>
    %104 = arith.addf %102, %103 : vector<8x16xf32>
    %105 = arith.negf %104 : vector<8x16xf32>
    %106 = math.exp %105 : vector<8x16xf32>
    %cst_29 = arith.constant 1.000000e+00 : f32
    %107 = vector.broadcast %cst_29 : f32 to vector<8x16xf32>
    %108 = arith.addf %107, %106 : vector<8x16xf32>
    %109 = arith.divf %107, %108 : vector<8x16xf32>
    %110 = arith.mulf %97, %78 : vector<8x16xf32>
    %111 = arith.mulf %89, %101 : vector<8x16xf32>
    %112 = arith.addf %110, %111 : vector<8x16xf32>
    %113 = math.tanh %112 : vector<8x16xf32>
    %114 = arith.mulf %109, %113 : vector<8x16xf32>
    %115 = vector.extract_strided_slice %5 {offsets = [24, 0], sizes = [8, 64], strides = [1, 1]} : vector<64x64xf32> to vector<8x64xf32>
    %116 = vector.extract_strided_slice %115 {offsets = [0, 0], sizes = [8, 16], strides = [1, 1]} : vector<8x64xf32> to vector<8x16xf32>
    %cst_30 = arith.constant dense<0.000000e+00> : vector<8x16xf32>
    %117 = tpu.matmul %114, %7, %cst_30 {dimension_numbers = #tpu.dot_dimension_numbers<[1], [0], [0], [1], [0, 0, 1, 1], [], []>} : vector<8x16xf32>, vector<16x16xf32>, vector<8x16xf32> -> vector<8x16xf32>
    %118 = arith.addf %116, %117 : vector<8x16xf32>
    %119 = arith.negf %118 : vector<8x16xf32>
    %120 = math.exp %119 : vector<8x16xf32>
    %cst_31 = arith.constant 1.000000e+00 : f32
    %121 = vector.broadcast %cst_31 : f32 to vector<8x16xf32>
    %122 = arith.addf %121, %120 : vector<8x16xf32>
    %123 = arith.divf %121, %122 : vector<8x16xf32>
    %124 = vector.extract_strided_slice %115 {offsets = [0, 16], sizes = [8, 16], strides = [1, 1]} : vector<8x64xf32> to vector<8x16xf32>
    %cst_32 = arith.constant dense<0.000000e+00> : vector<8x16xf32>
    %125 = tpu.matmul %114, %8, %cst_32 {dimension_numbers = #tpu.dot_dimension_numbers<[1], [0], [0], [1], [0, 0, 1, 1], [], []>} : vector<8x16xf32>, vector<16x16xf32>, vector<8x16xf32> -> vector<8x16xf32>
    %126 = arith.addf %124, %125 : vector<8x16xf32>
    %127 = arith.negf %126 : vector<8x16xf32>
    %128 = math.exp %127 : vector<8x16xf32>
    %cst_33 = arith.constant 1.000000e+00 : f32
    %129 = vector.broadcast %cst_33 : f32 to vector<8x16xf32>
    %130 = arith.addf %129, %128 : vector<8x16xf32>
    %131 = arith.divf %129, %130 : vector<8x16xf32>
    %132 = vector.extract_strided_slice %115 {offsets = [0, 32], sizes = [8, 16], strides = [1, 1]} : vector<8x64xf32> to vector<8x16xf32>
    %cst_34 = arith.constant dense<0.000000e+00> : vector<8x16xf32>
    %133 = tpu.matmul %114, %9, %cst_34 {dimension_numbers = #tpu.dot_dimension_numbers<[1], [0], [0], [1], [0, 0, 1, 1], [], []>} : vector<8x16xf32>, vector<16x16xf32>, vector<8x16xf32> -> vector<8x16xf32>
    %134 = arith.addf %132, %133 : vector<8x16xf32>
    %135 = math.tanh %134 : vector<8x16xf32>
    %136 = vector.extract_strided_slice %115 {offsets = [0, 48], sizes = [8, 16], strides = [1, 1]} : vector<8x64xf32> to vector<8x16xf32>
    %cst_35 = arith.constant dense<0.000000e+00> : vector<8x16xf32>
    %137 = tpu.matmul %114, %10, %cst_35 {dimension_numbers = #tpu.dot_dimension_numbers<[1], [0], [0], [1], [0, 0, 1, 1], [], []>} : vector<8x16xf32>, vector<16x16xf32>, vector<8x16xf32> -> vector<8x16xf32>
    %138 = arith.addf %136, %137 : vector<8x16xf32>
    %139 = arith.negf %138 : vector<8x16xf32>
    %140 = math.exp %139 : vector<8x16xf32>
    %cst_36 = arith.constant 1.000000e+00 : f32
    %141 = vector.broadcast %cst_36 : f32 to vector<8x16xf32>
    %142 = arith.addf %141, %140 : vector<8x16xf32>
    %143 = arith.divf %141, %142 : vector<8x16xf32>
    %144 = arith.mulf %131, %112 : vector<8x16xf32>
    %145 = arith.mulf %123, %135 : vector<8x16xf32>
    %146 = arith.addf %144, %145 : vector<8x16xf32>
    %147 = math.tanh %146 : vector<8x16xf32>
    %148 = arith.mulf %143, %147 : vector<8x16xf32>
    %149 = vector.extract_strided_slice %5 {offsets = [32, 0], sizes = [8, 64], strides = [1, 1]} : vector<64x64xf32> to vector<8x64xf32>
    %150 = vector.extract_strided_slice %149 {offsets = [0, 0], sizes = [8, 16], strides = [1, 1]} : vector<8x64xf32> to vector<8x16xf32>
    %cst_37 = arith.constant dense<0.000000e+00> : vector<8x16xf32>
    %151 = tpu.matmul %148, %7, %cst_37 {dimension_numbers = #tpu.dot_dimension_numbers<[1], [0], [0], [1], [0, 0, 1, 1], [], []>} : vector<8x16xf32>, vector<16x16xf32>, vector<8x16xf32> -> vector<8x16xf32>
    %152 = arith.addf %150, %151 : vector<8x16xf32>
    %153 = arith.negf %152 : vector<8x16xf32>
    %154 = math.exp %153 : vector<8x16xf32>
    %cst_38 = arith.constant 1.000000e+00 : f32
    %155 = vector.broadcast %cst_38 : f32 to vector<8x16xf32>
    %156 = arith.addf %155, %154 : vector<8x16xf32>
    %157 = arith.divf %155, %156 : vector<8x16xf32>
    %158 = vector.extract_strided_slice %149 {offsets = [0, 16], sizes = [8, 16], strides = [1, 1]} : vector<8x64xf32> to vector<8x16xf32>
    %cst_39 = arith.constant dense<0.000000e+00> : vector<8x16xf32>
    %159 = tpu.matmul %148, %8, %cst_39 {dimension_numbers = #tpu.dot_dimension_numbers<[1], [0], [0], [1], [0, 0, 1, 1], [], []>} : vector<8x16xf32>, vector<16x16xf32>, vector<8x16xf32> -> vector<8x16xf32>
    %160 = arith.addf %158, %159 : vector<8x16xf32>
    %161 = arith.negf %160 : vector<8x16xf32>
    %162 = math.exp %161 : vector<8x16xf32>
    %cst_40 = arith.constant 1.000000e+00 : f32
    %163 = vector.broadcast %cst_40 : f32 to vector<8x16xf32>
    %164 = arith.addf %163, %162 : vector<8x16xf32>
    %165 = arith.divf %163, %164 : vector<8x16xf32>
    %166 = vector.extract_strided_slice %149 {offsets = [0, 32], sizes = [8, 16], strides = [1, 1]} : vector<8x64xf32> to vector<8x16xf32>
    %cst_41 = arith.constant dense<0.000000e+00> : vector<8x16xf32>
    %167 = tpu.matmul %148, %9, %cst_41 {dimension_numbers = #tpu.dot_dimension_numbers<[1], [0], [0], [1], [0, 0, 1, 1], [], []>} : vector<8x16xf32>, vector<16x16xf32>, vector<8x16xf32> -> vector<8x16xf32>
    %168 = arith.addf %166, %167 : vector<8x16xf32>
    %169 = math.tanh %168 : vector<8x16xf32>
    %170 = vector.extract_strided_slice %149 {offsets = [0, 48], sizes = [8, 16], strides = [1, 1]} : vector<8x64xf32> to vector<8x16xf32>
    %cst_42 = arith.constant dense<0.000000e+00> : vector<8x16xf32>
    %171 = tpu.matmul %148, %10, %cst_42 {dimension_numbers = #tpu.dot_dimension_numbers<[1], [0], [0], [1], [0, 0, 1, 1], [], []>} : vector<8x16xf32>, vector<16x16xf32>, vector<8x16xf32> -> vector<8x16xf32>
    %172 = arith.addf %170, %171 : vector<8x16xf32>
    %173 = arith.negf %172 : vector<8x16xf32>
    %174 = math.exp %173 : vector<8x16xf32>
    %cst_43 = arith.constant 1.000000e+00 : f32
    %175 = vector.broadcast %cst_43 : f32 to vector<8x16xf32>
    %176 = arith.addf %175, %174 : vector<8x16xf32>
    %177 = arith.divf %175, %176 : vector<8x16xf32>
    %178 = arith.mulf %165, %146 : vector<8x16xf32>
    %179 = arith.mulf %157, %169 : vector<8x16xf32>
    %180 = arith.addf %178, %179 : vector<8x16xf32>
    %181 = math.tanh %180 : vector<8x16xf32>
    %182 = arith.mulf %177, %181 : vector<8x16xf32>
    %183 = vector.extract_strided_slice %5 {offsets = [40, 0], sizes = [8, 64], strides = [1, 1]} : vector<64x64xf32> to vector<8x64xf32>
    %184 = vector.extract_strided_slice %183 {offsets = [0, 0], sizes = [8, 16], strides = [1, 1]} : vector<8x64xf32> to vector<8x16xf32>
    %cst_44 = arith.constant dense<0.000000e+00> : vector<8x16xf32>
    %185 = tpu.matmul %182, %7, %cst_44 {dimension_numbers = #tpu.dot_dimension_numbers<[1], [0], [0], [1], [0, 0, 1, 1], [], []>} : vector<8x16xf32>, vector<16x16xf32>, vector<8x16xf32> -> vector<8x16xf32>
    %186 = arith.addf %184, %185 : vector<8x16xf32>
    %187 = arith.negf %186 : vector<8x16xf32>
    %188 = math.exp %187 : vector<8x16xf32>
    %cst_45 = arith.constant 1.000000e+00 : f32
    %189 = vector.broadcast %cst_45 : f32 to vector<8x16xf32>
    %190 = arith.addf %189, %188 : vector<8x16xf32>
    %191 = arith.divf %189, %190 : vector<8x16xf32>
    %192 = vector.extract_strided_slice %183 {offsets = [0, 16], sizes = [8, 16], strides = [1, 1]} : vector<8x64xf32> to vector<8x16xf32>
    %cst_46 = arith.constant dense<0.000000e+00> : vector<8x16xf32>
    %193 = tpu.matmul %182, %8, %cst_46 {dimension_numbers = #tpu.dot_dimension_numbers<[1], [0], [0], [1], [0, 0, 1, 1], [], []>} : vector<8x16xf32>, vector<16x16xf32>, vector<8x16xf32> -> vector<8x16xf32>
    %194 = arith.addf %192, %193 : vector<8x16xf32>
    %195 = arith.negf %194 : vector<8x16xf32>
    %196 = math.exp %195 : vector<8x16xf32>
    %cst_47 = arith.constant 1.000000e+00 : f32
    %197 = vector.broadcast %cst_47 : f32 to vector<8x16xf32>
    %198 = arith.addf %197, %196 : vector<8x16xf32>
    %199 = arith.divf %197, %198 : vector<8x16xf32>
    %200 = vector.extract_strided_slice %183 {offsets = [0, 32], sizes = [8, 16], strides = [1, 1]} : vector<8x64xf32> to vector<8x16xf32>
    %cst_48 = arith.constant dense<0.000000e+00> : vector<8x16xf32>
    %201 = tpu.matmul %182, %9, %cst_48 {dimension_numbers = #tpu.dot_dimension_numbers<[1], [0], [0], [1], [0, 0, 1, 1], [], []>} : vector<8x16xf32>, vector<16x16xf32>, vector<8x16xf32> -> vector<8x16xf32>
    %202 = arith.addf %200, %201 : vector<8x16xf32>
    %203 = math.tanh %202 : vector<8x16xf32>
    %204 = vector.extract_strided_slice %183 {offsets = [0, 48], sizes = [8, 16], strides = [1, 1]} : vector<8x64xf32> to vector<8x16xf32>
    %cst_49 = arith.constant dense<0.000000e+00> : vector<8x16xf32>
    %205 = tpu.matmul %182, %10, %cst_49 {dimension_numbers = #tpu.dot_dimension_numbers<[1], [0], [0], [1], [0, 0, 1, 1], [], []>} : vector<8x16xf32>, vector<16x16xf32>, vector<8x16xf32> -> vector<8x16xf32>
    %206 = arith.addf %204, %205 : vector<8x16xf32>
    %207 = arith.negf %206 : vector<8x16xf32>
    %208 = math.exp %207 : vector<8x16xf32>
    %cst_50 = arith.constant 1.000000e+00 : f32
    %209 = vector.broadcast %cst_50 : f32 to vector<8x16xf32>
    %210 = arith.addf %209, %208 : vector<8x16xf32>
    %211 = arith.divf %209, %210 : vector<8x16xf32>
    %212 = arith.mulf %199, %180 : vector<8x16xf32>
    %213 = arith.mulf %191, %203 : vector<8x16xf32>
    %214 = arith.addf %212, %213 : vector<8x16xf32>
    %215 = math.tanh %214 : vector<8x16xf32>
    %216 = arith.mulf %211, %215 : vector<8x16xf32>
    %217 = vector.extract_strided_slice %5 {offsets = [48, 0], sizes = [8, 64], strides = [1, 1]} : vector<64x64xf32> to vector<8x64xf32>
    %218 = vector.extract_strided_slice %217 {offsets = [0, 0], sizes = [8, 16], strides = [1, 1]} : vector<8x64xf32> to vector<8x16xf32>
    %cst_51 = arith.constant dense<0.000000e+00> : vector<8x16xf32>
    %219 = tpu.matmul %216, %7, %cst_51 {dimension_numbers = #tpu.dot_dimension_numbers<[1], [0], [0], [1], [0, 0, 1, 1], [], []>} : vector<8x16xf32>, vector<16x16xf32>, vector<8x16xf32> -> vector<8x16xf32>
    %220 = arith.addf %218, %219 : vector<8x16xf32>
    %221 = arith.negf %220 : vector<8x16xf32>
    %222 = math.exp %221 : vector<8x16xf32>
    %cst_52 = arith.constant 1.000000e+00 : f32
    %223 = vector.broadcast %cst_52 : f32 to vector<8x16xf32>
    %224 = arith.addf %223, %222 : vector<8x16xf32>
    %225 = arith.divf %223, %224 : vector<8x16xf32>
    %226 = vector.extract_strided_slice %217 {offsets = [0, 16], sizes = [8, 16], strides = [1, 1]} : vector<8x64xf32> to vector<8x16xf32>
    %cst_53 = arith.constant dense<0.000000e+00> : vector<8x16xf32>
    %227 = tpu.matmul %216, %8, %cst_53 {dimension_numbers = #tpu.dot_dimension_numbers<[1], [0], [0], [1], [0, 0, 1, 1], [], []>} : vector<8x16xf32>, vector<16x16xf32>, vector<8x16xf32> -> vector<8x16xf32>
    %228 = arith.addf %226, %227 : vector<8x16xf32>
    %229 = arith.negf %228 : vector<8x16xf32>
    %230 = math.exp %229 : vector<8x16xf32>
    %cst_54 = arith.constant 1.000000e+00 : f32
    %231 = vector.broadcast %cst_54 : f32 to vector<8x16xf32>
    %232 = arith.addf %231, %230 : vector<8x16xf32>
    %233 = arith.divf %231, %232 : vector<8x16xf32>
    %234 = vector.extract_strided_slice %217 {offsets = [0, 32], sizes = [8, 16], strides = [1, 1]} : vector<8x64xf32> to vector<8x16xf32>
    %cst_55 = arith.constant dense<0.000000e+00> : vector<8x16xf32>
    %235 = tpu.matmul %216, %9, %cst_55 {dimension_numbers = #tpu.dot_dimension_numbers<[1], [0], [0], [1], [0, 0, 1, 1], [], []>} : vector<8x16xf32>, vector<16x16xf32>, vector<8x16xf32> -> vector<8x16xf32>
    %236 = arith.addf %234, %235 : vector<8x16xf32>
    %237 = math.tanh %236 : vector<8x16xf32>
    %238 = vector.extract_strided_slice %217 {offsets = [0, 48], sizes = [8, 16], strides = [1, 1]} : vector<8x64xf32> to vector<8x16xf32>
    %cst_56 = arith.constant dense<0.000000e+00> : vector<8x16xf32>
    %239 = tpu.matmul %216, %10, %cst_56 {dimension_numbers = #tpu.dot_dimension_numbers<[1], [0], [0], [1], [0, 0, 1, 1], [], []>} : vector<8x16xf32>, vector<16x16xf32>, vector<8x16xf32> -> vector<8x16xf32>
    %240 = arith.addf %238, %239 : vector<8x16xf32>
    %241 = arith.negf %240 : vector<8x16xf32>
    %242 = math.exp %241 : vector<8x16xf32>
    %cst_57 = arith.constant 1.000000e+00 : f32
    %243 = vector.broadcast %cst_57 : f32 to vector<8x16xf32>
    %244 = arith.addf %243, %242 : vector<8x16xf32>
    %245 = arith.divf %243, %244 : vector<8x16xf32>
    %246 = arith.mulf %233, %214 : vector<8x16xf32>
    %247 = arith.mulf %225, %237 : vector<8x16xf32>
    %248 = arith.addf %246, %247 : vector<8x16xf32>
    %249 = math.tanh %248 : vector<8x16xf32>
    %250 = arith.mulf %245, %249 : vector<8x16xf32>
    %251 = vector.extract_strided_slice %5 {offsets = [56, 0], sizes = [8, 64], strides = [1, 1]} : vector<64x64xf32> to vector<8x64xf32>
    %252 = vector.extract_strided_slice %251 {offsets = [0, 0], sizes = [8, 16], strides = [1, 1]} : vector<8x64xf32> to vector<8x16xf32>
    %cst_58 = arith.constant dense<0.000000e+00> : vector<8x16xf32>
    %253 = tpu.matmul %250, %7, %cst_58 {dimension_numbers = #tpu.dot_dimension_numbers<[1], [0], [0], [1], [0, 0, 1, 1], [], []>} : vector<8x16xf32>, vector<16x16xf32>, vector<8x16xf32> -> vector<8x16xf32>
    %254 = arith.addf %252, %253 : vector<8x16xf32>
    %255 = arith.negf %254 : vector<8x16xf32>
    %256 = math.exp %255 : vector<8x16xf32>
    %cst_59 = arith.constant 1.000000e+00 : f32
    %257 = vector.broadcast %cst_59 : f32 to vector<8x16xf32>
    %258 = arith.addf %257, %256 : vector<8x16xf32>
    %259 = arith.divf %257, %258 : vector<8x16xf32>
    %260 = vector.extract_strided_slice %251 {offsets = [0, 16], sizes = [8, 16], strides = [1, 1]} : vector<8x64xf32> to vector<8x16xf32>
    %cst_60 = arith.constant dense<0.000000e+00> : vector<8x16xf32>
    %261 = tpu.matmul %250, %8, %cst_60 {dimension_numbers = #tpu.dot_dimension_numbers<[1], [0], [0], [1], [0, 0, 1, 1], [], []>} : vector<8x16xf32>, vector<16x16xf32>, vector<8x16xf32> -> vector<8x16xf32>
    %262 = arith.addf %260, %261 : vector<8x16xf32>
    %263 = arith.negf %262 : vector<8x16xf32>
    %264 = math.exp %263 : vector<8x16xf32>
    %cst_61 = arith.constant 1.000000e+00 : f32
    %265 = vector.broadcast %cst_61 : f32 to vector<8x16xf32>
    %266 = arith.addf %265, %264 : vector<8x16xf32>
    %267 = arith.divf %265, %266 : vector<8x16xf32>
    %268 = vector.extract_strided_slice %251 {offsets = [0, 32], sizes = [8, 16], strides = [1, 1]} : vector<8x64xf32> to vector<8x16xf32>
    %cst_62 = arith.constant dense<0.000000e+00> : vector<8x16xf32>
    %269 = tpu.matmul %250, %9, %cst_62 {dimension_numbers = #tpu.dot_dimension_numbers<[1], [0], [0], [1], [0, 0, 1, 1], [], []>} : vector<8x16xf32>, vector<16x16xf32>, vector<8x16xf32> -> vector<8x16xf32>
    %270 = arith.addf %268, %269 : vector<8x16xf32>
    %271 = math.tanh %270 : vector<8x16xf32>
    %272 = vector.extract_strided_slice %251 {offsets = [0, 48], sizes = [8, 16], strides = [1, 1]} : vector<8x64xf32> to vector<8x16xf32>
    %cst_63 = arith.constant dense<0.000000e+00> : vector<8x16xf32>
    %273 = tpu.matmul %250, %10, %cst_63 {dimension_numbers = #tpu.dot_dimension_numbers<[1], [0], [0], [1], [0, 0, 1, 1], [], []>} : vector<8x16xf32>, vector<16x16xf32>, vector<8x16xf32> -> vector<8x16xf32>
    %274 = arith.addf %272, %273 : vector<8x16xf32>
    %275 = arith.negf %274 : vector<8x16xf32>
    %276 = math.exp %275 : vector<8x16xf32>
    %cst_64 = arith.constant 1.000000e+00 : f32
    %277 = vector.broadcast %cst_64 : f32 to vector<8x16xf32>
    %278 = arith.addf %277, %276 : vector<8x16xf32>
    %279 = arith.divf %277, %278 : vector<8x16xf32>
    %280 = arith.mulf %267, %248 : vector<8x16xf32>
    %281 = arith.mulf %259, %271 : vector<8x16xf32>
    %282 = arith.addf %280, %281 : vector<8x16xf32>
    %283 = math.tanh %282 : vector<8x16xf32>
    %284 = arith.mulf %279, %283 : vector<8x16xf32>
    %c0_65 = arith.constant 0 : index
    %c0_66 = arith.constant 0 : index
    %285 = vector.load %arg4[%c0_65, %c0_66] : memref<16x2xf32, #tpu.memory_space<vmem>>, vector<16x2xf32>
    %cst_67 = arith.constant dense<0.000000e+00> : vector<8x2xf32>
    %286 = tpu.matmul %284, %285, %cst_67 {dimension_numbers = #tpu.dot_dimension_numbers<[1], [0], [0], [1], [0, 0, 1, 1], [], []>} : vector<8x16xf32>, vector<16x2xf32>, vector<8x2xf32> -> vector<8x2xf32>
    %c0_68 = arith.constant 0 : index
    %c0_69 = arith.constant 0 : index
    %287 = vector.load %arg5[%c0_68, %c0_69] : memref<1x2xf32, #tpu.memory_space<vmem>>, vector<1x2xf32>
    %288 = vector.broadcast %287 : vector<1x2xf32> to vector<8x2xf32>
    %289 = arith.addf %286, %288 : vector<8x2xf32>
    %c0_70 = arith.constant 0 : index
    %c0_71 = arith.constant 0 : index
    %290 = vector.load %arg6[%c0_70, %c0_71] : memref<8x2xf32, #tpu.memory_space<vmem>>, vector<8x2xf32>
    tpu.vector_store %arg6[%c0_70, %c0_71], %289 {strides = array<i32>} : memref<8x2xf32, #tpu.memory_space<vmem>>, vector<8x2xf32>,
    return
  }
}

</mosaic_0001>

<bundles_post_ra>
// kernel: test_model_forward.1
= control target key start
LH: loop header
LB: loop body
LE: loop exit
PB: predicated region body
PF: predicated region fallthrough
CT: control target
= control target key end

     0   :  { %vm40_vm0 = vcmask 130048   ;;  %v3650_v3 = vmov 0.0|0.0   ;;  %vm3651_vm1 = vmmov 0   ;;  %v3652_v4 = vmov 0.0   ;;  %s3653_s30 = smov 112   ;;  %s3654_s7 = smov 80   ;;  %s4038_s2 = inlined_call_operand.vmem [shape: f32[16,64], index: 2, kind: input, shape index: {}]   ;;  %s4039_s1 = inlined_call_operand.vmem [shape: f32[16,64], index: 1, kind: input, shape index: {}]   ;;  %s4040_s0 = inlined_call_operand.vmem [shape: f32[64,16], index: 0, kind: input, shape index: {}]   ;;  %s4041_s3 = inlined_call_operand.vmem [shape: f32[1,64], index: 3, kind: input, shape index: {}]   ;;  %s4042_s4 = inlined_call_operand.vmem [shape: f32[16,2], index: 4, kind: input, shape index: {}]   ;;  %s4043_s5 = inlined_call_operand.vmem [shape: f32[1,2], index: 5, kind: input, shape index: {}]   ;;  %s4044_s6 = inlined_call_operand.vmem [shape: f32[8,2], index: 6, kind: output, shape index: {}]  }
   0x1   :  { %v170_v0 = vld [vmem:[%s4038_s2] sm:$0xff]  ;;  %v171_v1 = vld [vmem:[%s4038_s2 + $0x8] sm:$0xff]  ;;  %3399 = vmatprep.subr.bf16.mxu1 %v3650_v3  ;;  %3168 = vmatprep.mubr.msk.f32.mxu1 %vm3651_vm1, %v3652_v4  ;;  %s3656_s10 = smov 32   ;;  %s3657_s11 = smov 16   ;;  %v25_v54 = vld [vmem:[%s4040_s0 + $0x10] sm:$0xff]  ;;  %vm2970_vm2 = vcmask 15360  }
   0x2   :  { %v31_v2 = vld [vmem:[%s4039_s1] sm:$0xff]  ;;  %v3507_v5 = vpack.i.bf16 %v171_v1, %v170_v0  ;;  %v3706_v6 = vpack.c.bf16 %v171_v1, %v170_v0  ;;  %v32_v7 = vld [vmem:[%s4039_s1 + $0x8] sm:$0xff]  ;;  %s3655_s1 = smov 96   ;;  %s3658_s12 = smov 48   ;;  %v26_v55 = vld [vmem:[%s4040_s0 + $0x18] sm:$0xff] }
   0x3   :  { %v23_v8 = vld [vmem:[%s4040_s0] sm:$0xff]  ;;  %v3395_v9 = vpack.c.bf16 %v32_v7, %v31_v2  ;;  %v24_v10 = vld [vmem:[%s4040_s0 + $0x8] sm:$0xff]  ;;  %v29_v58 = vld [vmem:[%s4040_s0 + $0x30] sm:$0xff] }
   0x4   :  { %3152 = vmatprep.mubr.msk.f32.mxu0 %vm40_vm0, %v23_v8  ;;  %3508 = vrot.lane.b32.xlu0 %v3507_v5, %s3653_s30  ;;  %v3760_v33 = vld [vmem:[%s4041_s3] ss:$0 sm:$0xff]  ;;  %v28_v57 = vld [vmem:[%s4040_s0 + $0x28] sm:$0xff]  ;;  %v30_v59 = vld [vmem:[%s4040_s0 + $0x38] sm:$0xff] }
   0x5   :  { %3518 = vrot.lane.b32.xlu1 %v3507_v5, %s3654_s7  ;;  %3396 = vmatprep.subr.bf16.mxu0 %v3395_v9  ;;  %v27_v56 = vld [vmem:[%s4040_s0 + $0x20] sm:$0xff] }
   0x6   :  { %3401 = vmatpush3.bf16.msra.mxu1 %v3706_v6  ;;  %3398 = vmatpush3.bf16.msra.mxu0 %v3395_v9 }
   0x7   :  { %3402 = vmatprep.subr.bf16.mxu1 %v3650_v3  ;;  %3411 = vmatprep.subr.bf16.mxu0 %v3650_v3 }
   0x8   :  { %3513 = vrot.lane.b32.xlu0 %v3507_v5, %s3655_s1 }
   0x9   :  { %3169 = vmatmul.mubr.f32.vlgmr.msra.gmra.mrb[0].mxu1 %v3652_v4  ;;  %3153 = vmatmul.mubr.msk.f32.vlgmr.msra.gmra.mrb[0].mxu0 %vm40_vm0, %v24_v10 }
   0xa   :  { %3175 = vmatprep.mubr.msk.f32.mxu1 %vm3651_vm1, %v3652_v4  ;;  %3413 = vmatpush3.bf16.msra.mxu0 %v3706_v6 }
   0xb   :  { %3417 = vmatprep.subr.bf16.mxu0 %v3650_v3  ;;  %3155 = vmatprep.mubr.msk.f32.mxu0 %vm40_vm0, %v25_v54 }
   0xd   :  { %3156 = vmatmul.mubr.msk.f32.gmra.mrb[2].mxu0 %vm40_vm0, %v26_v55 }
   0xe   :  { %3158 = vmatprep.mubr.msk.f32.mxu0 %vm40_vm0, %v27_v56 }
  0x11   :  { %3159 = vmatmul.mubr.msk.f32.gmra.mrb[4].mxu0 %vm40_vm0, %v28_v57 }
  0x12   :  { %3161 = vmatprep.mubr.msk.f32.mxu0 %vm40_vm0, %v29_v58 }
  0x15   :  { %3162 = vmatmul.mubr.msk.f32.gmra.mrb[6].mxu0 %vm40_vm0, %v30_v59 }
  0x16   :  { %3196 = vmatprep.mubr.msk.f32.mxu0 %vm3651_vm1, %v3652_v4 }
  0x76   :  { %v3509_v11 = vpop.permute.xlu0 %3508 }
  0x77   :  { %v3511_v12 = vunpack.i.h.bf16 %v3509_v11  ;;  %v3510_v13 = vunpack.i.l.bf16 %v3509_v11  ;;  %v3519_v14 = vpop.permute.xlu1 %3518 }
  0x78   :  { %v3521_v19 = vunpack.i.h.bf16 %v3519_v14  ;;  %v3520_v20 = vunpack.i.l.bf16 %v3519_v14 }
  0x79   :  { %v3729_v15 = vpack.c.bf16 %v3511_v12, %v3510_v13 }
  0x7a   :  { %v3514_v16 = vpop.permute.xlu0 %3513  ;;  %v3736_v22 = vpack.c.bf16 %v3521_v19, %v3520_v20 }
  0x7b   :  { %v3516_v17 = vunpack.i.h.bf16 %v3514_v16  ;;  %v3515_v18 = vunpack.i.l.bf16 %v3514_v16  ;;  %3404 = vmatpush3.bf16.msra.mxu1 %v3729_v15 }
  0x7c   :  { %3405 = vmatprep.subr.bf16.mxu1 %v3650_v3 }
  0x7d   :  { %v3733_v21 = vpack.c.bf16 %v3516_v17, %v3515_v18 }
  0x7e   :  { %3176 = vmatmul.mubr.f32.vlgmr.msra.gmra.mrb[2].mxu1 %v3652_v4 }
  0x7f   :  { %3407 = vmatpush3.bf16.msra.mxu1 %v3733_v21  ;;  %3182 = vmatprep.mubr.msk.f32.mxu1 %vm3651_vm1, %v3652_v4 }
  0x80   :  { %3408 = vmatprep.subr.bf16.mxu1 %v3650_v3 }
  0x82   :  { %3183 = vmatmul.mubr.f32.vlgmr.msra.gmra.mrb[4].mxu1 %v3652_v4 }
  0x83   :  { %3410 = vmatpush3.bf16.msra.mxu1 %v3736_v22  ;;  %3189 = vmatprep.mubr.msk.f32.mxu1 %vm3651_vm1, %v3652_v4 }
  0x84   :  { %3414 = vmatprep.subr.bf16.mxu1 %v3650_v3 }
  0x86   :  { %3190 = vmatmul.mubr.f32.vlgmr.msra.gmra.mrb[6].mxu1 %v3652_v4 }
  0x87   :  { %3416 = vmatpush3.bf16.msra.mxu1 %v3729_v15  ;;  %3203 = vmatprep.mubr.msk.f32.mxu1 %vm3651_vm1, %v3652_v4 }
  0x88   :  { %3420 = vmatprep.subr.bf16.mxu1 %v3650_v3 }
  0xdc   :  { %v241_v23 = vpop.f32.mrb[0].mxu1  ;;  %v3752_v24 = vpop.f32.mrb[0].mxu0 }
  0xdd   :  { %v3170_v25 = vpop.f32.mrb[1].mxu1  ;;  %v131_v26 = vpop.f32.mrb[1].mxu0 }
  0xde   :  { %v132_v34 = vadd.f32 %v3760_v33, %v131_v26 }
  0xe0   :  { %v245_v38 = vadd.f32 %v241_v23, %v132_v34  ;;  %v3796_v8 = vpop.f32.mrb[2].mxu0 }
  0xe1   :  { %v3798_v9 = vpop.f32.mrb[3].mxu0 }
  0xe2   :  { %v2985_v39 = vmul.f32 -1.442695, %v245_v38 }
  0xe4   :  { %v3800_v10 = vpop.f32.mrb[4].mxu0 }
  0xe5   :  { %v3802_v11 = vpop.f32.mrb[5].mxu0 }
  0xe8   :  { %v3804_v12 = vpop.f32.mrb[6].mxu0 }
  0xe9   :  { %v3806_v13 = vpop.f32.mrb[7].mxu0 }
 0x151   :  { %v326_v27 = vpop.f32.mrb[2].mxu1 }
 0x152   :  { %v3177_v28 = vpop.f32.mrb[3].mxu1 }
 0x155   :  { %v413_v29 = vpop.f32.mrb[4].mxu1 }
 0x156   :  { %418 = vrot.lane.b32.xlu1 %v413_v29, %s3656_s10  ;;  %v3184_v30 = vpop.f32.mrb[5].mxu1 }
 0x159   :  { %v495_v31 = vpop.f32.mrb[6].mxu1 }
 0x15a   :  { %331 = vrot.lane.b32.xlu1 %v326_v27, %s3657_s11  ;;  %v3191_v32 = vpop.f32.mrb[7].mxu1  ;;  %v137_v27 = vadd.f32 %v3752_v24, %v3760_v33 }
 0x15e   :  { %500 = vrot.lane.b32.xlu1 %v495_v31, %s3658_s12 }
 0x1c8   :  { %v419_v35 = vpop.permute.xlu1 %418 }
 0x1c9   :  { %v421_v36 = vadd.f32 %v419_v35, %v132_v34 }
 0x1cb   :  { %3522 = vtanh.f32 %v421_v36 }
 0x1cc   :  { %3524 = vpow2.f32 %v2985_v39  ;;  %v332_v45 = vpop.permute.xlu1 %331 }
 0x1cd   :  { %v334_v46 = vadd.f32 %v332_v45, %v132_v34 }
 0x1cf   :  { %v2986_v47 = vmul.f32 -1.442695, %v334_v46 }
 0x1d0   :  { %v501_v61 = vpop.permute.xlu1 %500 }
 0x1d1   :  { %v503_v62 = vadd.f32 %v501_v61, %v132_v34 }
 0x1d3   :  { %v2987_v63 = vmul.f32 -1.442695, %v503_v62 }
 0x1d5   :  { %v3523_v37 = vpop.eup %3522 }
 0x1d6   :  { %512 = vrot.lane.b32.xlu0 %v3523_v37, %s3655_s1  ;;  %v3525_v40 = vpop.eup %3524 }
 0x1d7   :  { %v249_v41 = vadd.f32 1.0, %v3525_v40 }
 0x1d9   :  { %3526 = vrcp.f32 %v249_v41 }
 0x1da   :  { %3528 = vpow2.f32 %v2986_v47 }
 0x1e3   :  { %v3527_v42 = vpop.eup %3526 }
 0x1e4   :  { %v3529_v48 = vpop.eup %3528 }
 0x1e5   :  { %v338_v49 = vadd.f32 1.0, %v3529_v48 }
 0x1e7   :  { %3530 = vrcp.f32 %v338_v49 }
 0x1f1   :  { %v3531_v50 = vpop.eup %3530 }
 0x1f2   :  { %v510_v51 = vmul.f32 0.0, %v3531_v50 }
 0x248   :  { %v513_v43 = vpop.permute.xlu0 %512 }
 0x249   :  { %v515_v44 = vmul.f32 %v3527_v42, %v513_v43 }
 0x24b   :  { %517 = vrot.lane.b32.xlu0 %v515_v44, %s3657_s11 }
 0x2bd   :  { %v518_v52 = vpop.permute.xlu0 %517 }
 0x2be   :  { %v3765_v53 = vadd.f32 %v518_v52, %v510_v51 }
 0x2c0   :  { %3532 = vtanh.f32 %v3765_v53 }
 0x2c1   :  { %3534 = vpow2.f32 %v2987_v63 }
 0x2ca   :  { %v3533_v60 = vpop.eup %3532 }
 0x2cb   :  { %523 = vrot.lane.b32.xlu0 %v3533_v60, %s3656_s10  ;;  %v3535_v0 = vpop.eup %3534 }
 0x2cc   :  { %v507_v1 = vadd.f32 1.0, %v3535_v0 }
 0x2ce   :  { %3536 = vrcp.f32 %v507_v1  ;;  %v142_v1 = vadd.f32 %v3760_v33, %v3798_v9 }
 0x2d8   :  { %v3537_v2 = vpop.eup %3536 }
 0x33d   :  { %v524_v5 = vpop.permute.xlu0 %523 }
 0x33e   :  { %v526_v7 = vmul.f32 %v3537_v2, %v524_v5 }
 0x340   :  { %528 = vrot.lane.b32.xlu1 %v526_v7, %s3654_s7 }
 0x3b2   :  { %v529_v14 = vpop.permute.xlu1 %528 }
 0x3b3   :  { %3197 = vmatmul.mubr.msk.f32.vlgmr.msra.gmra.mrb[8].mxu0 %vm40_vm0, %v529_v14  ;;  %3204 = vmatmul.mubr.msk.f32.vlgmr.msra.gmra.mrb[8].mxu1 %vm40_vm0, %v529_v14 }
 0x3b4   :  { %3419 = vmatpush3.bf16.msra.mxu0 %v3733_v21  ;;  %3422 = vmatpush3.bf16.msra.mxu1 %v3736_v22 }
 0x3b5   :  { %3210 = vmatprep.mubr.msk.f32.mxu0 %vm3651_vm1, %v3652_v4  ;;  %3217 = vmatprep.mubr.msk.f32.mxu1 %vm3651_vm1, %v3652_v4 }
 0x3b6   :  { %3426 = vmatprep.subr.bf16.mxu1 %v3650_v3  ;;  %3423 = vmatprep.subr.bf16.mxu0 %v3650_v3 }
 0x3b7   :  { %3211 = vmatmul.mubr.msk.f32.vlgmr.msra.gmra.mrb[10].mxu0 %vm40_vm0, %v529_v14  ;;  %3218 = vmatmul.mubr.msk.f32.vlgmr.msra.gmra.mrb[10].mxu1 %vm40_vm0, %v529_v14 }
 0x3b8   :  { %3428 = vmatpush3.bf16.msra.mxu1 %v3729_v15  ;;  %3425 = vmatpush3.bf16.msra.mxu0 %v3706_v6 }
 0x3b9   :  { %3224 = vmatprep.mubr.msk.f32.mxu0 %vm3651_vm1, %v3652_v4  ;;  %3231 = vmatprep.mubr.msk.f32.mxu1 %vm3651_vm1, %v3652_v4 }
 0x3ba   :  { %3429 = vmatprep.subr.bf16.mxu0 %v3650_v3  ;;  %3432 = vmatprep.subr.bf16.mxu1 %v3650_v3 }
 0x486   :  { %v598_v16 = vpop.f32.mrb[8].mxu0  ;;  %v675_v17 = vpop.f32.mrb[8].mxu1 }
 0x487   :  { %v3198_v18 = vpop.f32.mrb[9].mxu0  ;;  %v3205_v19 = vpop.f32.mrb[9].mxu1  ;;  %v602_v31 = vadd.f32 %v598_v16, %v137_v27 }
 0x489   :  { %v2989_v32 = vmul.f32 -1.442695, %v602_v31 }
 0x48a   :  { %v756_v20 = vpop.f32.mrb[10].mxu0  ;;  %v832_v23 = vpop.f32.mrb[10].mxu1 }
 0x48b   :  { %v3219_v25 = vpop.f32.mrb[11].mxu1  ;;  %761 = vrot.lane.b32.xlu0 %v756_v20, %s3656_s10  ;;  %v3212_v26 = vpop.f32.mrb[11].mxu0 }
 0x48f   :  { %680 = vrot.lane.b32.xlu0 %v675_v17, %s3657_s11 }
 0x493   :  { %837 = vrot.lane.b32.xlu0 %v832_v23, %s3658_s12 }
 0x4fd   :  { %v762_v28 = vpop.permute.xlu0 %761 }
 0x4fe   :  { %v764_v29 = vadd.f32 %v762_v28, %v137_v27 }
 0x500   :  { %3538 = vtanh.f32 %v764_v29 }
 0x501   :  { %3540 = vpow2.f32 %v2989_v32  ;;  %v681_v39 = vpop.permute.xlu0 %680 }
 0x502   :  { %v683_v40 = vadd.f32 %v681_v39, %v137_v27 }
 0x504   :  { %v2991_v24 = vmul.f32 -1.442695, %v683_v40 }
 0x505   :  { %v838_v48 = vpop.permute.xlu0 %837 }
 0x506   :  { %v840_v49 = vadd.f32 %v838_v48, %v137_v27 }
 0x508   :  { %v2994_v50 = vmul.f32 -1.442695, %v840_v49 }
 0x50a   :  { %v3539_v30 = vpop.eup %3538 }
 0x50b   :  { %849 = vrot.lane.b32.xlu1 %v3539_v30, %s3655_s1  ;;  %v3541_v34 = vpop.eup %3540 }
 0x50c   :  { %v606_v35 = vadd.f32 1.0, %v3541_v34 }
 0x50e   :  { %3542 = vrcp.f32 %v606_v35 }
 0x50f   :  { %3544 = vpow2.f32 %v2991_v24 }
 0x518   :  { %v3543_v36 = vpop.eup %3542 }
 0x519   :  { %v3545_v41 = vpop.eup %3544 }
 0x51a   :  { %v687_v42 = vadd.f32 1.0, %v3545_v41 }
 0x51c   :  { %3546 = vrcp.f32 %v687_v42 }
 0x526   :  { %v3547_v43 = vpop.eup %3546 }
 0x527   :  { %v847_v44 = vmul.f32 %v3547_v43, %v3765_v53 }
 0x57d   :  { %v850_v37 = vpop.permute.xlu1 %849 }
 0x57e   :  { %v852_v38 = vmul.f32 %v3543_v36, %v850_v37 }
 0x580   :  { %854 = vrot.lane.b32.xlu1 %v852_v38, %s3657_s11 }
 0x5f2   :  { %v855_v45 = vpop.permute.xlu1 %854 }
 0x5f3   :  { %v3836_v46 = vadd.f32 %v855_v45, %v847_v44 }
 0x5f5   :  { %3548 = vtanh.f32 %v3836_v46 }
 0x5f6   :  { %3550 = vpow2.f32 %v2994_v50 }
 0x5ff   :  { %v3549_v47 = vpop.eup %3548 }
 0x600   :  { %860 = vrot.lane.b32.xlu1 %v3549_v47, %s3656_s10  ;;  %v3551_v51 = vpop.eup %3550 }
 0x601   :  { %v844_v52 = vadd.f32 1.0, %v3551_v51  ;;  %v147_v51 = vadd.f32 %v3796_v8, %v3760_v33 }
 0x603   :  { %3552 = vrcp.f32 %v844_v52 }
 0x60d   :  { %v3553_v54 = vpop.eup %3552 }
 0x672   :  { %v861_v55 = vpop.permute.xlu1 %860 }
 0x673   :  { %v863_v56 = vmul.f32 %v3553_v54, %v861_v55 }
 0x675   :  { %865 = vrot.lane.b32.xlu0 %v863_v56, %s3654_s7 }
 0x6e7   :  { %v866_v53 = vpop.permute.xlu0 %865 }
 0x6e8   :  { %3225 = vmatmul.mubr.msk.f32.vlgmr.msra.gmra.mrb[12].mxu0 %vm40_vm0, %v866_v53  ;;  %3232 = vmatmul.mubr.msk.f32.vlgmr.msra.gmra.mrb[12].mxu1 %vm40_vm0, %v866_v53 }
 0x6e9   :  { %3431 = vmatpush3.bf16.msra.mxu0 %v3733_v21  ;;  %3434 = vmatpush3.bf16.msra.mxu1 %v3736_v22 }
 0x6ea   :  { %3238 = vmatprep.mubr.msk.f32.mxu0 %vm3651_vm1, %v3652_v4  ;;  %3245 = vmatprep.mubr.msk.f32.mxu1 %vm3651_vm1, %v3652_v4 }
 0x6eb   :  { %3438 = vmatprep.subr.bf16.mxu1 %v3650_v3  ;;  %3435 = vmatprep.subr.bf16.mxu0 %v3650_v3 }
 0x6ec   :  { %3239 = vmatmul.mubr.msk.f32.vlgmr.msra.gmra.mrb[14].mxu0 %vm40_vm0, %v866_v53  ;;  %3246 = vmatmul.mubr.msk.f32.vlgmr.msra.gmra.mrb[14].mxu1 %vm40_vm0, %v866_v53 }
 0x6ed   :  { %3440 = vmatpush3.bf16.msra.mxu1 %v3729_v15  ;;  %3437 = vmatpush3.bf16.msra.mxu0 %v3706_v6 }
 0x6ee   :  { %3252 = vmatprep.mubr.msk.f32.mxu0 %vm3651_vm1, %v3652_v4  ;;  %3259 = vmatprep.mubr.msk.f32.mxu1 %vm3651_vm1, %v3652_v4 }
 0x6ef   :  { %3441 = vmatprep.subr.bf16.mxu0 %v3650_v3  ;;  %3444 = vmatprep.subr.bf16.mxu1 %v3650_v3 }
 0x7bb   :  { %v935_v57 = vpop.f32.mrb[12].mxu0  ;;  %v1012_v58 = vpop.f32.mrb[12].mxu1 }
 0x7bc   :  { %v3226_v59 = vpop.f32.mrb[13].mxu0  ;;  %v3233_v60 = vpop.f32.mrb[13].mxu1  ;;  %v939_v14 = vadd.f32 %v935_v57, %v142_v1 }
 0x7be   :  { %v2996_v16 = vmul.f32 -1.442695, %v939_v14 }
 0x7bf   :  { %v1093_v61 = vpop.f32.mrb[14].mxu0  ;;  %v1169_v62 = vpop.f32.mrb[14].mxu1 }
 0x7c0   :  { %v3247_v63 = vpop.f32.mrb[15].mxu1  ;;  %1098 = vrot.lane.b32.xlu1 %v1093_v61, %s3656_s10  ;;  %v3240_v0 = vpop.f32.mrb[15].mxu0 }
 0x7c4   :  { %1017 = vrot.lane.b32.xlu1 %v1012_v58, %s3657_s11 }
 0x7c8   :  { %1174 = vrot.lane.b32.xlu1 %v1169_v62, %s3658_s12 }
 0x832   :  { %v1099_v2 = vpop.permute.xlu1 %1098 }
 0x833   :  { %v1101_v5 = vadd.f32 %v1099_v2, %v142_v1 }
 0x835   :  { %3554 = vtanh.f32 %v1101_v5 }
 0x836   :  { %3556 = vpow2.f32 %v2996_v16  ;;  %v1018_v25 = vpop.permute.xlu1 %1017 }
 0x837   :  { %v1020_v26 = vadd.f32 %v1018_v25, %v142_v1 }
 0x839   :  { %v2998_v9 = vmul.f32 -1.442695, %v1020_v26 }
 0x83a   :  { %v1175_v35 = vpop.permute.xlu1 %1174 }
 0x83b   :  { %v1177_v36 = vadd.f32 %v1175_v35, %v142_v1 }
 0x83d   :  { %v3001_v37 = vmul.f32 -1.442695, %v1177_v36 }
 0x83f   :  { %v3555_v7 = vpop.eup %3554 }
 0x840   :  { %1186 = vrot.lane.b32.xlu0 %v3555_v7, %s3655_s1  ;;  %v3557_v17 = vpop.eup %3556 }
 0x841   :  { %v943_v18 = vadd.f32 1.0, %v3557_v17 }
 0x843   :  { %3558 = vrcp.f32 %v943_v18 }
 0x844   :  { %3560 = vpow2.f32 %v2998_v9 }
 0x84d   :  { %v3559_v19 = vpop.eup %3558 }
 0x84e   :  { %v3561_v27 = vpop.eup %3560 }
 0x84f   :  { %v1024_v28 = vadd.f32 1.0, %v3561_v27 }
 0x851   :  { %3562 = vrcp.f32 %v1024_v28 }
 0x85b   :  { %v3563_v29 = vpop.eup %3562 }
 0x85c   :  { %v1184_v30 = vmul.f32 %v3563_v29, %v3836_v46 }
 0x8b2   :  { %v1187_v20 = vpop.permute.xlu0 %1186 }
 0x8b3   :  { %v1189_v23 = vmul.f32 %v3559_v19, %v1187_v20 }
 0x8b5   :  { %1191 = vrot.lane.b32.xlu0 %v1189_v23, %s3657_s11 }
 0x927   :  { %v1192_v31 = vpop.permute.xlu0 %1191 }
 0x928   :  { %v3869_v32 = vadd.f32 %v1192_v31, %v1184_v30 }
 0x92a   :  { %3564 = vtanh.f32 %v3869_v32 }
 0x92b   :  { %3566 = vpow2.f32 %v3001_v37  ;;  %v152_v37 = vadd.f32 %v3760_v33, %v3802_v11 }
 0x934   :  { %v3565_v34 = vpop.eup %3564 }
 0x935   :  { %1197 = vrot.lane.b32.xlu0 %v3565_v34, %s3656_s10  ;;  %v3567_v38 = vpop.eup %3566 }
 0x936   :  { %v1181_v39 = vadd.f32 1.0, %v3567_v38 }
 0x938   :  { %3568 = vrcp.f32 %v1181_v39 }
 0x942   :  { %v3569_v40 = vpop.eup %3568 }
 0x9a7   :  { %v1198_v24 = vpop.permute.xlu0 %1197 }
 0x9a8   :  { %v1200_v41 = vmul.f32 %v3569_v40, %v1198_v24 }
 0x9aa   :  { %1202 = vrot.lane.b32.xlu1 %v1200_v41, %s3654_s7 }
 0xa1c   :  { %v1203_v42 = vpop.permute.xlu1 %1202 }
 0xa1d   :  { %3253 = vmatmul.mubr.msk.f32.vlgmr.msra.gmra.mrb[16].mxu0 %vm40_vm0, %v1203_v42  ;;  %3260 = vmatmul.mubr.msk.f32.vlgmr.msra.gmra.mrb[16].mxu1 %vm40_vm0, %v1203_v42 }
 0xa1e   :  { %3443 = vmatpush3.bf16.msra.mxu0 %v3733_v21  ;;  %3446 = vmatpush3.bf16.msra.mxu1 %v3736_v22 }
 0xa1f   :  { %3266 = vmatprep.mubr.msk.f32.mxu0 %vm3651_vm1, %v3652_v4  ;;  %3273 = vmatprep.mubr.msk.f32.mxu1 %vm3651_vm1, %v3652_v4 }
 0xa20   :  { %3450 = vmatprep.subr.bf16.mxu1 %v3650_v3  ;;  %3447 = vmatprep.subr.bf16.mxu0 %v3650_v3 }
 0xa21   :  { %3267 = vmatmul.mubr.msk.f32.vlgmr.msra.gmra.mrb[18].mxu0 %vm40_vm0, %v1203_v42  ;;  %3274 = vmatmul.mubr.msk.f32.vlgmr.msra.gmra.mrb[18].mxu1 %vm40_vm0, %v1203_v42 }
 0xa22   :  { %3452 = vmatpush3.bf16.msra.mxu1 %v3729_v15  ;;  %3449 = vmatpush3.bf16.msra.mxu0 %v3706_v6 }
 0xa23   :  { %3280 = vmatprep.mubr.msk.f32.mxu0 %vm3651_vm1, %v3652_v4  ;;  %3287 = vmatprep.mubr.msk.f32.mxu1 %vm3651_vm1, %v3652_v4 }
 0xa24   :  { %3453 = vmatprep.subr.bf16.mxu0 %v3650_v3  ;;  %3456 = vmatprep.subr.bf16.mxu1 %v3650_v3 }
 0xaf0   :  { %v1272_v43 = vpop.f32.mrb[16].mxu0  ;;  %v1349_v44 = vpop.f32.mrb[16].mxu1 }
 0xaf1   :  { %v3254_v45 = vpop.f32.mrb[17].mxu0  ;;  %v3261_v46 = vpop.f32.mrb[17].mxu1  ;;  %v1276_v56 = vadd.f32 %v1272_v43, %v147_v51 }
 0xaf3   :  { %v3003_v53 = vmul.f32 -1.442695, %v1276_v56 }
 0xaf4   :  { %v1430_v47 = vpop.f32.mrb[18].mxu0  ;;  %v1506_v48 = vpop.f32.mrb[18].mxu1 }
 0xaf5   :  { %v3275_v49 = vpop.f32.mrb[19].mxu1  ;;  %1435 = vrot.lane.b32.xlu0 %v1430_v47, %s3656_s10  ;;  %v3268_v50 = vpop.f32.mrb[19].mxu0 }
 0xaf9   :  { %1354 = vrot.lane.b32.xlu0 %v1349_v44, %s3657_s11 }
 0xafd   :  { %1511 = vrot.lane.b32.xlu0 %v1506_v48, %s3658_s12 }
 0xb67   :  { %v1436_v52 = vpop.permute.xlu0 %1435 }
 0xb68   :  { %v1438_v54 = vadd.f32 %v1436_v52, %v147_v51 }
 0xb6a   :  { %3570 = vtanh.f32 %v1438_v54 }
 0xb6b   :  { %3572 = vpow2.f32 %v3003_v53  ;;  %v1355_v62 = vpop.permute.xlu0 %1354 }
 0xb6c   :  { %v1357_v63 = vadd.f32 %v1355_v62, %v147_v51 }
 0xb6e   :  { %v3005_v8 = vmul.f32 -1.442695, %v1357_v63 }
 0xb6f   :  { %v1512_v17 = vpop.permute.xlu0 %1511 }
 0xb70   :  { %v1514_v18 = vadd.f32 %v1512_v17, %v147_v51 }
 0xb72   :  { %v3008_v19 = vmul.f32 -1.442695, %v1514_v18  ;;  %v157_v18 = vadd.f32 %v3800_v10, %v3760_v33 }
 0xb74   :  { %v3571_v55 = vpop.eup %3570 }
 0xb75   :  { %1523 = vrot.lane.b32.xlu1 %v3571_v55, %s3655_s1  ;;  %v3573_v57 = vpop.eup %3572 }
 0xb76   :  { %v1280_v58 = vadd.f32 1.0, %v3573_v57 }
 0xb78   :  { %3574 = vrcp.f32 %v1280_v58 }
 0xb79   :  { %3576 = vpow2.f32 %v3005_v8 }
 0xb82   :  { %v3575_v59 = vpop.eup %3574 }
 0xb83   :  { %v3577_v0 = vpop.eup %3576 }
 0xb84   :  { %v1361_v1 = vadd.f32 1.0, %v3577_v0 }
 0xb86   :  { %3578 = vrcp.f32 %v1361_v1 }
 0xb90   :  { %v3579_v2 = vpop.eup %3578 }
 0xb91   :  { %v1521_v5 = vmul.f32 %v3579_v2, %v3869_v32 }
 0xbe7   :  { %v1524_v60 = vpop.permute.xlu1 %1523 }
 0xbe8   :  { %v1526_v61 = vmul.f32 %v3575_v59, %v1524_v60 }
 0xbea   :  { %1528 = vrot.lane.b32.xlu1 %v1526_v61, %s3657_s11 }
 0xc5c   :  { %v1529_v7 = vpop.permute.xlu1 %1528 }
 0xc5d   :  { %v3902_v14 = vadd.f32 %v1529_v7, %v1521_v5 }
 0xc5f   :  { %3580 = vtanh.f32 %v3902_v14 }
 0xc60   :  { %3582 = vpow2.f32 %v3008_v19 }
 0xc69   :  { %v3581_v16 = vpop.eup %3580 }
 0xc6a   :  { %1534 = vrot.lane.b32.xlu1 %v3581_v16, %s3656_s10  ;;  %v3583_v20 = vpop.eup %3582 }
 0xc6b   :  { %v1518_v23 = vadd.f32 1.0, %v3583_v20 }
 0xc6d   :  { %3584 = vrcp.f32 %v1518_v23 }
 0xc77   :  { %v3585_v25 = vpop.eup %3584 }
 0xcdc   :  { %v1535_v26 = vpop.permute.xlu1 %1534 }
 0xcdd   :  { %v1537_v9 = vmul.f32 %v3585_v25, %v1535_v26 }
 0xcdf   :  { %1539 = vrot.lane.b32.xlu0 %v1537_v9, %s3654_s7 }
 0xd51   :  { %v1540_v27 = vpop.permute.xlu0 %1539 }
 0xd52   :  { %3281 = vmatmul.mubr.msk.f32.vlgmr.msra.gmra.mrb[20].mxu0 %vm40_vm0, %v1540_v27  ;;  %3288 = vmatmul.mubr.msk.f32.vlgmr.msra.gmra.mrb[20].mxu1 %vm40_vm0, %v1540_v27 }
 0xd53   :  { %3455 = vmatpush3.bf16.msra.mxu0 %v3733_v21  ;;  %3458 = vmatpush3.bf16.msra.mxu1 %v3736_v22 }
 0xd54   :  { %3294 = vmatprep.mubr.msk.f32.mxu0 %vm3651_vm1, %v3652_v4  ;;  %3301 = vmatprep.mubr.msk.f32.mxu1 %vm3651_vm1, %v3652_v4 }
 0xd55   :  { %3462 = vmatprep.subr.bf16.mxu1 %v3650_v3  ;;  %3459 = vmatprep.subr.bf16.mxu0 %v3650_v3 }
 0xd56   :  { %3295 = vmatmul.mubr.msk.f32.vlgmr.msra.gmra.mrb[22].mxu0 %vm40_vm0, %v1540_v27  ;;  %3302 = vmatmul.mubr.msk.f32.vlgmr.msra.gmra.mrb[22].mxu1 %vm40_vm0, %v1540_v27 }
 0xd57   :  { %3464 = vmatpush3.bf16.msra.mxu1 %v3729_v15  ;;  %3461 = vmatpush3.bf16.msra.mxu0 %v3706_v6 }
 0xd58   :  { %3308 = vmatprep.mubr.msk.f32.mxu0 %vm3651_vm1, %v3652_v4  ;;  %3315 = vmatprep.mubr.msk.f32.mxu1 %vm3651_vm1, %v3652_v4 }
 0xd59   :  { %3465 = vmatprep.subr.bf16.mxu0 %v3650_v3  ;;  %3468 = vmatprep.subr.bf16.mxu1 %v3650_v3 }
 0xe25   :  { %v1609_v28 = vpop.f32.mrb[20].mxu0  ;;  %v1686_v29 = vpop.f32.mrb[20].mxu1 }
 0xe26   :  { %v3282_v30 = vpop.f32.mrb[21].mxu0  ;;  %v3289_v31 = vpop.f32.mrb[21].mxu1  ;;  %v1613_v24 = vadd.f32 %v1609_v28, %v152_v37 }
 0xe28   :  { %v3010_v41 = vmul.f32 -1.442695, %v1613_v24 }
 0xe29   :  { %v1767_v32 = vpop.f32.mrb[22].mxu0  ;;  %v1843_v34 = vpop.f32.mrb[22].mxu1 }
 0xe2a   :  { %v3303_v35 = vpop.f32.mrb[23].mxu1  ;;  %1772 = vrot.lane.b32.xlu1 %v1767_v32, %s3656_s10  ;;  %v3296_v36 = vpop.f32.mrb[23].mxu0 }
 0xe2e   :  { %1691 = vrot.lane.b32.xlu1 %v1686_v29, %s3657_s11 }
 0xe32   :  { %1848 = vrot.lane.b32.xlu1 %v1843_v34, %s3658_s12 }
 0xe9c   :  { %v1773_v38 = vpop.permute.xlu1 %1772 }
 0xe9d   :  { %v1775_v39 = vadd.f32 %v1773_v38, %v152_v37 }
 0xe9f   :  { %3586 = vtanh.f32 %v1775_v39 }
 0xea0   :  { %3588 = vpow2.f32 %v3010_v41  ;;  %v1692_v47 = vpop.permute.xlu1 %1691 }
 0xea1   :  { %v1694_v48 = vadd.f32 %v1692_v47, %v152_v37 }
 0xea3   :  { %v3012_v11 = vmul.f32 -1.442695, %v1694_v48 }
 0xea4   :  { %v1849_v53 = vpop.permute.xlu1 %1848 }
 0xea5   :  { %v1851_v57 = vadd.f32 %v1849_v53, %v152_v37 }
 0xea7   :  { %v3015_v58 = vmul.f32 -1.442695, %v1851_v57 }
 0xea9   :  { %v3587_v40 = vpop.eup %3586 }
 0xeaa   :  { %1860 = vrot.lane.b32.xlu0 %v3587_v40, %s3655_s1  ;;  %v3589_v42 = vpop.eup %3588 }
 0xeab   :  { %v1617_v43 = vadd.f32 1.0, %v3589_v42 }
 0xead   :  { %3590 = vrcp.f32 %v1617_v43 }
 0xeae   :  { %3592 = vpow2.f32 %v3012_v11 }
 0xeb7   :  { %v3591_v44 = vpop.eup %3590 }
 0xeb8   :  { %v3593_v49 = vpop.eup %3592 }
 0xeb9   :  { %v1698_v50 = vadd.f32 1.0, %v3593_v49 }
 0xebb   :  { %3594 = vrcp.f32 %v1698_v50 }
 0xec5   :  { %v3595_v51 = vpop.eup %3594 }
 0xec6   :  { %v1858_v52 = vmul.f32 %v3595_v51, %v3902_v14 }
 0xf1c   :  { %v1861_v45 = vpop.permute.xlu0 %1860 }
 0xf1d   :  { %v1863_v46 = vmul.f32 %v3591_v44, %v1861_v45 }
 0xf1f   :  { %1865 = vrot.lane.b32.xlu0 %v1863_v46, %s3657_s11 }
 0xf91   :  { %v1866_v54 = vpop.permute.xlu0 %1865 }
 0xf92   :  { %v3935_v55 = vadd.f32 %v1866_v54, %v1858_v52 }
 0xf94   :  { %3596 = vtanh.f32 %v3935_v55 }
 0xf95   :  { %3598 = vpow2.f32 %v3015_v58 }
 0xf9e   :  { %v3597_v56 = vpop.eup %3596 }
 0xf9f   :  { %1871 = vrot.lane.b32.xlu0 %v3597_v56, %s3656_s10  ;;  %v3599_v59 = vpop.eup %3598 }
 0xfa0   :  { %v1855_v60 = vadd.f32 1.0, %v3599_v59 }
 0xfa2   :  { %3600 = vrcp.f32 %v1855_v60 }
 0xfac   :  { %v3601_v61 = vpop.eup %3600 }
0x1011   :  { %v1872_v62 = vpop.permute.xlu0 %1871 }
0x1012   :  { %v1874_v63 = vmul.f32 %v3601_v61, %v1872_v62 }
0x1014   :  { %1876 = vrot.lane.b32.xlu1 %v1874_v63, %s3654_s7 }
0x1086   :  { %v1877_v8 = vpop.permute.xlu1 %1876 }
0x1087   :  { %3309 = vmatmul.mubr.msk.f32.vlgmr.msra.gmra.mrb[24].mxu0 %vm40_vm0, %v1877_v8  ;;  %3316 = vmatmul.mubr.msk.f32.vlgmr.msra.gmra.mrb[24].mxu1 %vm40_vm0, %v1877_v8 }
0x1088   :  { %3467 = vmatpush3.bf16.msra.mxu0 %v3733_v21  ;;  %3470 = vmatpush3.bf16.msra.mxu1 %v3736_v22 }
0x1089   :  { %3322 = vmatprep.mubr.msk.f32.mxu0 %vm3651_vm1, %v3652_v4  ;;  %3329 = vmatprep.mubr.msk.f32.mxu1 %vm3651_vm1, %v3652_v4 }
0x108a   :  { %3474 = vmatprep.subr.bf16.mxu1 %v3650_v3  ;;  %3471 = vmatprep.subr.bf16.mxu0 %v3650_v3 }
0x108b   :  { %3323 = vmatmul.mubr.msk.f32.vlgmr.msra.gmra.mrb[26].mxu0 %vm40_vm0, %v1877_v8  ;;  %3330 = vmatmul.mubr.msk.f32.vlgmr.msra.gmra.mrb[26].mxu1 %vm40_vm0, %v1877_v8 }
0x108c   :  { %3476 = vmatpush3.bf16.msra.mxu1 %v3729_v15  ;;  %3473 = vmatpush3.bf16.msra.mxu0 %v3706_v6 }
0x108d   :  { %3336 = vmatprep.mubr.msk.f32.mxu0 %vm3651_vm1, %v3652_v4  ;;  %3343 = vmatprep.mubr.msk.f32.mxu1 %vm3651_vm1, %v3652_v4 }
0x108e   :  { %3477 = vmatprep.subr.bf16.mxu0 %v3650_v3  ;;  %3480 = vmatprep.subr.bf16.mxu1 %v3650_v3 }
0x115a   :  { %v1946_v0 = vpop.f32.mrb[24].mxu0  ;;  %v2023_v1 = vpop.f32.mrb[24].mxu1 }
0x115b   :  { %v3310_v2 = vpop.f32.mrb[25].mxu0  ;;  %v3317_v5 = vpop.f32.mrb[25].mxu1  ;;  %v1950_v25 = vadd.f32 %v1946_v0, %v157_v18 }
0x115d   :  { %v3017_v26 = vmul.f32 -1.442695, %v1950_v25 }
0x115e   :  { %v2104_v7 = vpop.f32.mrb[26].mxu0  ;;  %v2180_v14 = vpop.f32.mrb[26].mxu1 }
0x115f   :  { %v3331_v16 = vpop.f32.mrb[27].mxu1  ;;  %2109 = vrot.lane.b32.xlu0 %v2104_v7, %s3656_s10  ;;  %v3324_v17 = vpop.f32.mrb[27].mxu0 }
0x1163   :  { %2028 = vrot.lane.b32.xlu0 %v2023_v1, %s3657_s11 }
0x1167   :  { %2185 = vrot.lane.b32.xlu0 %v2180_v14, %s3658_s12 }
0x11d1   :  { %v2110_v19 = vpop.permute.xlu0 %2109 }
0x11d2   :  { %v2112_v20 = vadd.f32 %v2110_v19, %v157_v18 }
0x11d4   :  { %3602 = vtanh.f32 %v2112_v20 }
0x11d5   :  { %3604 = vpow2.f32 %v3017_v26  ;;  %v2029_v31 = vpop.permute.xlu0 %2028 }
0x11d6   :  { %v2031_v32 = vadd.f32 %v2029_v31, %v157_v18 }
0x11d8   :  { %v3019_v10 = vmul.f32 -1.442695, %v2031_v32 }
0x11d9   :  { %v2186_v24 = vpop.permute.xlu0 %2185 }
0x11da   :  { %v2188_v41 = vadd.f32 %v2186_v24, %v157_v18 }
0x11dc   :  { %v3022_v42 = vmul.f32 -1.442695, %v2188_v41 }
0x11de   :  { %v3603_v23 = vpop.eup %3602 }
0x11df   :  { %2197 = vrot.lane.b32.xlu1 %v3603_v23, %s3655_s1  ;;  %v3605_v9 = vpop.eup %3604 }
0x11e0   :  { %v1954_v27 = vadd.f32 1.0, %v3605_v9 }
0x11e2   :  { %3606 = vrcp.f32 %v1954_v27 }
0x11e3   :  { %3608 = vpow2.f32 %v3019_v10 }
0x11ec   :  { %v3607_v28 = vpop.eup %3606 }
0x11ed   :  { %v3609_v34 = vpop.eup %3608 }
0x11ee   :  { %v2035_v35 = vadd.f32 1.0, %v3609_v34 }
0x11f0   :  { %3610 = vrcp.f32 %v2035_v35 }
0x11fa   :  { %v3611_v36 = vpop.eup %3610 }
0x11fb   :  { %v2195_v37 = vmul.f32 %v3611_v36, %v3935_v55 }
0x1251   :  { %v2198_v29 = vpop.permute.xlu1 %2197 }
0x1252   :  { %v2200_v30 = vmul.f32 %v3607_v28, %v2198_v29 }
0x1254   :  { %2202 = vrot.lane.b32.xlu1 %v2200_v30, %s3657_s11 }
0x12c6   :  { %v2203_v38 = vpop.permute.xlu1 %2202 }
0x12c7   :  { %v3968_v39 = vadd.f32 %v2203_v38, %v2195_v37 }
0x12c9   :  { %3612 = vtanh.f32 %v3968_v39 }
0x12ca   :  { %3614 = vpow2.f32 %v3022_v42 }
0x12d3   :  { %v3613_v40 = vpop.eup %3612 }
0x12d4   :  { %2208 = vrot.lane.b32.xlu1 %v3613_v40, %s3656_s10  ;;  %v3615_v43 = vpop.eup %3614 }
0x12d5   :  { %v2192_v44 = vadd.f32 1.0, %v3615_v43 }
0x12d7   :  { %3616 = vrcp.f32 %v2192_v44 }
0x12e1   :  { %v3617_v45 = vpop.eup %3616 }
0x1346   :  { %v2209_v46 = vpop.permute.xlu1 %2208 }
0x1347   :  { %v2211_v47 = vmul.f32 %v3617_v45, %v2209_v46 }
0x1349   :  { %2213 = vrot.lane.b32.xlu0 %v2211_v47, %s3654_s7 }
0x13bb   :  { %v2214_v48 = vpop.permute.xlu0 %2213 }
0x13bc   :  { %3337 = vmatmul.mubr.msk.f32.vlgmr.msra.gmra.mrb[28].mxu0 %vm40_vm0, %v2214_v48  ;;  %3344 = vmatmul.mubr.msk.f32.vlgmr.msra.gmra.mrb[28].mxu1 %vm40_vm0, %v2214_v48 }
0x13bd   :  { %3479 = vmatpush3.bf16.msra.mxu0 %v3733_v21  ;;  %3482 = vmatpush3.bf16.msra.mxu1 %v3736_v22 }
0x13be   :  { %3350 = vmatprep.mubr.msk.f32.mxu0 %vm3651_vm1, %v3652_v4  ;;  %3357 = vmatprep.mubr.msk.f32.mxu1 %vm3651_vm1, %v3652_v4 }
0x13bf   :  { %3486 = vmatprep.subr.bf16.mxu1 %v3650_v3  ;;  %3483 = vmatprep.subr.bf16.mxu0 %v3650_v3 }
0x13c0   :  { %3351 = vmatmul.mubr.msk.f32.vlgmr.msra.gmra.mrb[30].mxu0 %vm40_vm0, %v2214_v48  ;;  %3358 = vmatmul.mubr.msk.f32.vlgmr.msra.gmra.mrb[30].mxu1 %vm40_vm0, %v2214_v48 }
0x13c1   :  { %3488 = vmatpush3.bf16.msra.mxu1 %v3729_v15  ;;  %3485 = vmatpush3.bf16.msra.mxu0 %v3706_v6  ;;  %v162_v15 = vadd.f32 %v3760_v33, %v3806_v13 }
0x13c2   :  { %3364 = vmatprep.mubr.msk.f32.mxu0 %vm3651_vm1, %v3652_v4  ;;  %3371 = vmatprep.mubr.msk.f32.mxu1 %vm3651_vm1, %v3652_v4 }
0x13c3   :  { %3489 = vmatprep.subr.bf16.mxu0 %v3650_v3  ;;  %3492 = vmatprep.subr.bf16.mxu1 %v3650_v3 }
0x148f   :  { %v2283_v11 = vpop.f32.mrb[28].mxu0  ;;  %v2360_v49 = vpop.f32.mrb[28].mxu1 }
0x1490   :  { %v3338_v50 = vpop.f32.mrb[29].mxu0  ;;  %v3345_v51 = vpop.f32.mrb[29].mxu1  ;;  %v2287_v58 = vadd.f32 %v2283_v11, %v162_v15 }
0x1491   :  { %v2886_v50 = vld [vmem:[%s4042_s4] sm:$0xff]  ;;  %v2887_v51 = vld [vmem:[%s4042_s4 + $0x8] sm:$0xff] }
0x1492   :  { %v3024_v59 = vmul.f32 -1.442695, %v2287_v58 }
0x1493   :  { %v2441_v52 = vpop.f32.mrb[30].mxu0  ;;  %v2517_v54 = vpop.f32.mrb[30].mxu1 }
0x1494   :  { %v3359_v55 = vpop.f32.mrb[31].mxu1  ;;  %2446 = vrot.lane.b32.xlu1 %v2441_v52, %s3656_s10  ;;  %v3352_v6 = vpop.f32.mrb[31].mxu0  ;;  %v3496_v52 = vpack.c.bf16 %v2887_v51, %v2886_v50 }
0x1498   :  { %2365 = vrot.lane.b32.xlu1 %v2360_v49, %s3657_s11 }
0x149c   :  { %2522 = vrot.lane.b32.xlu1 %v2517_v54, %s3658_s12 }
0x1506   :  { %v2447_v56 = vpop.permute.xlu1 %2446 }
0x1507   :  { %v2449_v53 = vadd.f32 %v2447_v56, %v162_v15 }
0x1509   :  { %3618 = vtanh.f32 %v2449_v53 }
0x150a   :  { %3620 = vpow2.f32 %v3024_v59  ;;  %v2366_v0 = vpop.permute.xlu1 %2365 }
0x150b   :  { %v2368_v1 = vadd.f32 %v2366_v0, %v162_v15 }
0x150d   :  { %v3026_v13 = vmul.f32 -1.442695, %v2368_v1 }
0x150e   :  { %v2523_v19 = vpop.permute.xlu1 %2522 }
0x150f   :  { %v2525_v20 = vadd.f32 %v2523_v19, %v162_v15 }
0x1511   :  { %v3029_v23 = vmul.f32 -1.442695, %v2525_v20 }
0x1513   :  { %v3619_v57 = vpop.eup %3618 }
0x1514   :  { %2534 = vrot.lane.b32.xlu0 %v3619_v57, %s3655_s1  ;;  %v3621_v60 = vpop.eup %3620 }
0x1515   :  { %v2291_v61 = vadd.f32 1.0, %v3621_v60 }
0x1517   :  { %3622 = vrcp.f32 %v2291_v61  ;;  %v3037_v61 = vld [vmem:[%s4043_s5] ss:$0 sm:$0xff] }
0x1518   :  { %3624 = vpow2.f32 %v3026_v13 }
0x1521   :  { %v3623_v62 = vpop.eup %3622 }
0x1522   :  { %v3625_v2 = vpop.eup %3624 }
0x1523   :  { %v2372_v5 = vadd.f32 1.0, %v3625_v2 }
0x1525   :  { %3626 = vrcp.f32 %v2372_v5 }
0x152f   :  { %v3627_v7 = vpop.eup %3626 }
0x1530   :  { %v2532_v14 = vmul.f32 %v3627_v7, %v3968_v39 }
0x1586   :  { %v2535_v63 = vpop.permute.xlu0 %2534 }
0x1587   :  { %v2537_v8 = vmul.f32 %v3623_v62, %v2535_v63 }
0x1589   :  { %2539 = vrot.lane.b32.xlu0 %v2537_v8, %s3657_s11 }
0x15fb   :  { %v2540_v16 = vpop.permute.xlu0 %2539 }
0x15fc   :  { %v2542_v17 = vadd.f32 %v2540_v16, %v2532_v14 }
0x15fe   :  { %3628 = vtanh.f32 %v2542_v17 }
0x15ff   :  { %3630 = vpow2.f32 %v3029_v23 }
0x1608   :  { %v3629_v18 = vpop.eup %3628 }
0x1609   :  { %2545 = vrot.lane.b32.xlu0 %v3629_v18, %s3656_s10  ;;  %v3631_v25 = vpop.eup %3630 }
0x160a   :  { %v2529_v26 = vadd.f32 1.0, %v3631_v25 }
0x160c   :  { %3632 = vrcp.f32 %v2529_v26 }
0x1616   :  { %v3633_v9 = vpop.eup %3632 }
0x167b   :  { %v2546_v27 = vpop.permute.xlu0 %2545 }
0x167c   :  { %v2548_v28 = vmul.f32 %v3633_v9, %v2546_v27 }
0x167e   :  { %2550 = vrot.lane.b32.xlu1 %v2548_v28, %s3654_s7 }
0x16f0   :  { %v2551_v29 = vpop.permute.xlu1 %2550 }
0x16f1   :  { %3365 = vmatmul.mubr.msk.f32.vlgmr.msra.gmra.mrb[32].mxu0 %vm40_vm0, %v2551_v29  ;;  %3372 = vmatmul.mubr.msk.f32.vlgmr.msra.gmra.mrb[32].mxu1 %vm40_vm0, %v2551_v29 }
0x16f2   :  { %3491 = vmatpush3.bf16.msra.mxu0 %v3733_v21  ;;  %3494 = vmatpush3.bf16.msra.mxu1 %v3736_v22 }
0x16f3   :  { %3378 = vmatprep.mubr.msk.f32.mxu0 %vm3651_vm1, %v3652_v4  ;;  %3385 = vmatprep.mubr.msk.f32.mxu1 %vm3651_vm1, %v3652_v4 }
0x16f4   :  { %3495 = vmatprep.subr.bf16.mxu0 %v3650_v3  ;;  %v167_v3 = vadd.f32 %v3804_v12, %v3760_v33 }
0x16f5   :  { %3379 = vmatmul.mubr.msk.f32.vlgmr.msra.gmra.mrb[34].mxu0 %vm40_vm0, %v2551_v29  ;;  %3386 = vmatmul.mubr.msk.f32.vlgmr.msra.gmra.mrb[34].mxu1 %vm40_vm0, %v2551_v29 }
0x16f6   :  { %3392 = vmatprep.mubr.msk.f32.mxu0 %vm3651_vm1, %v3652_v4  ;;  %3497 = vmatpush3.bf16.msra.mxu0 %v3496_v52 }
0x17c4   :  { %v2620_v30 = vpop.f32.mrb[32].mxu0  ;;  %v2697_v31 = vpop.f32.mrb[32].mxu1 }
0x17c5   :  { %v3366_v21 = vpop.f32.mrb[33].mxu0  ;;  %v3373_v32 = vpop.f32.mrb[33].mxu1  ;;  %v2624_v38 = vadd.f32 %v2620_v30, %v167_v3 }
0x17c7   :  { %v3031_v39 = vmul.f32 -1.442695, %v2624_v38 }
0x17c8   :  { %v2778_v22 = vpop.f32.mrb[34].mxu0  ;;  %v2854_v10 = vpop.f32.mrb[34].mxu1 }
0x17c9   :  { %v3387_v34 = vpop.f32.mrb[35].mxu1  ;;  %2783 = vrot.lane.b32.xlu0 %v2778_v22, %s3656_s10  ;;  %v3380_v35 = vpop.f32.mrb[35].mxu0 }
0x17cd   :  { %2702 = vrot.lane.b32.xlu0 %v2697_v31, %s3657_s11 }
0x17d1   :  { %2859 = vrot.lane.b32.xlu0 %v2854_v10, %s3658_s12 }
0x183b   :  { %v2784_v36 = vpop.permute.xlu0 %2783 }
0x183c   :  { %v2786_v37 = vadd.f32 %v2784_v36, %v167_v3 }
0x183e   :  { %3634 = vtanh.f32 %v2786_v37 }
0x183f   :  { %3636 = vpow2.f32 %v3031_v39  ;;  %v2703_v44 = vpop.permute.xlu0 %2702 }
0x1840   :  { %v2705_v45 = vadd.f32 %v2703_v44, %v167_v3 }
0x1842   :  { %v3033_v33 = vmul.f32 -1.442695, %v2705_v45 }
0x1843   :  { %v2860_v55 = vpop.permute.xlu0 %2859 }
0x1844   :  { %v2862_v6 = vadd.f32 %v2860_v55, %v167_v3 }
0x1846   :  { %v3036_v15 = vmul.f32 -1.442695, %v2862_v6 }
0x1848   :  { %v3635_v4 = vpop.eup %3634 }
0x1849   :  { %2871 = vrot.lane.b32.xlu1 %v3635_v4, %s3655_s1  ;;  %v3637_v40 = vpop.eup %3636 }
0x184a   :  { %v2628_v24 = vadd.f32 1.0, %v3637_v40 }
0x184c   :  { %3638 = vrcp.f32 %v2628_v24 }
0x184d   :  { %3640 = vpow2.f32 %v3033_v33 }
0x1856   :  { %v3639_v41 = vpop.eup %3638 }
0x1857   :  { %v3641_v12 = vpop.eup %3640 }
0x1858   :  { %v2709_v46 = vadd.f32 1.0, %v3641_v12 }
0x185a   :  { %3642 = vrcp.f32 %v2709_v46 }
0x1864   :  { %v3643_v47 = vpop.eup %3642 }
0x1865   :  { %v2869_v48 = vmul.f32 %v3643_v47, %v2542_v17 }
0x18bb   :  { %v2872_v42 = vpop.permute.xlu1 %2871 }
0x18bc   :  { %v2874_v43 = vmul.f32 %v3639_v41, %v2872_v42 }
0x18be   :  { %2876 = vrot.lane.b32.xlu1 %v2874_v43, %s3657_s11 }
0x1930   :  { %v2877_v11 = vpop.permute.xlu1 %2876 }
0x1931   :  { %v2879_v49 = vadd.f32 %v2877_v11, %v2869_v48 }
0x1933   :  { %3644 = vtanh.f32 %v2879_v49 }
0x1934   :  { %3646 = vpow2.f32 %v3036_v15 }
0x193d   :  { %v3645_v54 = vpop.eup %3644 }
0x193e   :  { %2882 = vrot.lane.b32.xlu1 %v3645_v54, %s3656_s10  ;;  %v3647_v56 = vpop.eup %3646 }
0x193f   :  { %v2866_v53 = vadd.f32 1.0, %v3647_v56 }
0x1941   :  { %3648 = vrcp.f32 %v2866_v53 }
0x194b   :  { %v3649_v57 = vpop.eup %3648 }
0x19b0   :  { %v2883_v58 = vpop.permute.xlu1 %2882 }
0x19b1   :  { %v2885_v59 = vmul.f32 %v3649_v57, %v2883_v58 }
0x19b3   :  { %2896 = vrot.lane.b32.xlu0 %v2885_v59, %s3654_s7 }
0x1a25   :  { %v2897_v60 = vpop.permute.xlu0 %2896 }
0x1a26   :  { %3393 = vmatmul.mubr.msk.f32.vlgmr.msra.gmra.mrb[36].mxu0 %vm40_vm0, %v2897_v60 }
0x1af9   :  { %v2966_v62 = vpop.f32.mrb[36].mxu0 }
0x1afa   :  { %v2967_v63 = vadd.f32 %v3037_v61, %v2966_v62  ;;  %v3394_v8 = vpop.f32.mrb[37].mxu0 }
0x1afc   :  { %2971 = vst.msk [vmem:[%s4044_s6] sm:$0xff] %vm2970_vm2, %v2967_v63 }

</bundles_post_ra>
